<compile_context>
chip_gen: v7x
topology: tpu7x:2x2x1
jax: 0.10.0
libtpu: 0.0.40
codegen_flags: <defaults>
</compile_context>

<pallas_src>
import functools

import jax
import jax.numpy as jnp
from jax.experimental import pallas as pl
from jax.experimental.pallas import tpu as pltpu


_ITER_TOPK_MAX = 16  # use iterated-max threshold for K <= this, radix search otherwise


def _row_reduce(x, op):
    """Reduce a (NH, tb, th) array over axes (0, 2), keepdims -> (1, tb, 1)."""
    return op(op(x, axis=0, keepdims=True), axis=2, keepdims=True)


def _kth_largest(a, K):
    """Per-row K-th largest of a (NH, tb, th) f32 array (rows = axis 1) -> (tb, 1) f32."""
    if K <= _ITER_TOPK_MAX:
        # Small K: K-1 iterated max-and-mask passes.
        neg_inf = jnp.float32(-jnp.inf)
        tmp = a
        kth = _row_reduce(tmp, jnp.max)
        for _ in range(K - 1):
            tmp = jnp.where(tmp >= kth, neg_inf, tmp)
            kth = _row_reduce(tmp, jnp.max)
        return kth[0]

    # Large K: exact K-th largest via a fixed 32-pass MSB-first radix/binary search on the
    # order-preserving integer key of the f32 bit pattern (cost independent of K).
    min_i32 = jnp.int32(-(2 ** 31))
    max_i32 = jnp.int32(2 ** 31 - 1)
    bits = pltpu.bitcast(a, jnp.int32)
    # Monotone signed key (key order == float order); the mapping is an involution.
    keys = jnp.where(bits >= 0, bits, jnp.bitwise_xor(bits, max_i32))
    k_f = jnp.float32(K)
    p = jnp.zeros((1, a.shape[1], 1), jnp.int32)      # prefix in offset-binary space
    for j in range(31, -1, -1):
        bit = min_i32 if j == 31 else jnp.int32(1 << j)
        cand = jnp.bitwise_or(p, bit)
        thr = jnp.bitwise_xor(cand, min_i32)          # candidate back in signed-key space
        cnt = _row_reduce(
            jnp.where(keys >= thr, jnp.float32(1.0), jnp.float32(0.0)), jnp.sum)
        p = jnp.where(cnt >= k_f, cand, p)
    kth_key = jnp.bitwise_xor(p, min_i32)
    kth_bits = jnp.where(kth_key >= 0, kth_key, jnp.bitwise_xor(kth_key, max_i32))
    return pltpu.bitcast(kth_bits, jnp.float32)[0]


def _topk_sae_kernel(x_ref, wenc_ref, benc_ref, wdec_ref, bdec_ref,
                     xhat_ref, f_ref, a_scr, kth_scr, acc_scr, *, K, NH):
    k = pl.program_id(1)

    # ---- phase 1: encoder, one H-chunk of `a` per step ----------------------------------
    @pl.when(k < NH)
    def _encode():
        xbar = x_ref[...].astype(jnp.float32) - bdec_ref[...].astype(jnp.float32)
        a = jnp.dot(xbar.astype(wenc_ref.dtype), wenc_ref[...],
                    preferred_element_type=jnp.float32)
        a_scr[k] = a + benc_ref[...].astype(jnp.float32)

    # ---- once per batch tile: per-row K-th-largest threshold + accumulator init ---------
    @pl.when(k == NH)
    def _threshold():
        kth_scr[...] = _kth_largest(a_scr[...], K)
        acc_scr[...] = jnp.zeros_like(acc_scr)

    # ---- phase 2: decoder, one H-chunk per step ------------------------------------------
    # TODO(synk): exact torch.topk tie-breaking (keep exactly K on duplicated values) is
    # approximated by an `a >= kth` threshold; identical whenever values are distinct.
    @pl.when(k >= NH)
    def _decode():
        a = a_scr[k - NH]                                   # (tb, th) f32
        f = jnp.where(a >= kth_scr[...],
                      jnp.maximum(a, jnp.float32(0.0)), jnp.float32(0.0))
        f_ref[...] = f.astype(f_ref.dtype)
        acc_scr[...] += jnp.dot(f.astype(wdec_ref.dtype), wdec_ref[...],
                                preferred_element_type=jnp.float32)

    @pl.when(k == 2 * NH - 1)
    def _finalize():
        xhat_ref[...] = (acc_scr[...]
                         + bdec_ref[...].astype(jnp.float32)).astype(xhat_ref.dtype)


def _round_up(n, m):
    return ((n + m - 1) // m) * m


def _default_vmem_limit():
    try:
        cap = int(pltpu.get_tpu_info().vmem_capacity_bytes)
        return max(32 << 20, min(cap - (16 << 20), 100 << 20))
    except Exception:  # best-effort query; fall back to a value safe on all generations
        return 48 << 20


def topk_sae_forward(x, w_enc, b_enc, w_dec, b_dec, K, *,
                     tile_b=128, tile_h=512, vmem_limit_bytes=None):
    """x: [B, F]; w_enc: [H, F]; b_enc: [H]; w_dec: [F, H]; b_dec: [F].  Returns (xhat, f)."""
    B, F = x.shape
    H = w_enc.shape[0]
    assert w_enc.shape == (H, F) and b_enc.shape == (H,)
    assert w_dec.shape == (F, H) and b_dec.shape == (F,)
    K = int(K)
    if not 1 <= K <= H:
        raise ValueError(f"K={K} must be in [1, {H}]")

    # ---- TPU-friendly padding / tiling ---------------------------------------------------
    sub = max(8, 32 // jnp.dtype(x.dtype).itemsize)       # sublane packing granule
    Fp = _round_up(F, 128)
    Hp = _round_up(H, 128)
    tb = min(_round_up(int(tile_b), sub), _round_up(B, sub))
    Bp = _round_up(B, tb)
    th = 128
    for cand in (int(tile_h), 512, 256, 128):
        cand = _round_up(min(cand, Hp), 128)
        if Hp % cand == 0:
            th = cand
            break
    NH = Hp // th
    NB = Bp // tb

    # glue: pre-transpose weights, 2-D biases, zero-pad to aligned shapes (in production
    # the padded/transposed weights would be prepared once, not per call).
    dt = x.dtype
    x_p = jnp.zeros((Bp, Fp), dt).at[:B, :F].set(x)
    wenc_t = jnp.zeros((Fp, Hp), w_enc.dtype).at[:F, :H].set(w_enc.T)
    benc_p = jnp.zeros((1, Hp), b_enc.dtype).at[0, :H].set(b_enc)
    wdec_t = jnp.zeros((Hp, Fp), w_dec.dtype).at[:H, :F].set(w_dec.T)
    bdec_p = jnp.zeros((1, Fp), b_dec.dtype).at[0, :F].set(b_dec)

    if vmem_limit_bytes is None:
        vmem_limit_bytes = _default_vmem_limit()

    kernel = functools.partial(_topk_sae_kernel, K=K, NH=NH)

    xhat_p, f_p = pl.pallas_call(
        kernel,
        out_shape=(jax.ShapeDtypeStruct((Bp, Fp), dt),
                   jax.ShapeDtypeStruct((Bp, Hp), dt)),
        grid_spec=pltpu.PrefetchScalarGridSpec(
            num_scalar_prefetch=0,
            grid=(NB, 2 * NH),
            in_specs=[
                pl.BlockSpec((tb, Fp), lambda i, k: (i, 0)),                       # x tile
                pl.BlockSpec((Fp, th), lambda i, k: (0, jnp.minimum(k, NH - 1))),  # W_enc^T chunk
                pl.BlockSpec((1, th), lambda i, k: (0, jnp.minimum(k, NH - 1))),   # b_enc chunk
                pl.BlockSpec((th, Fp), lambda i, k: (jnp.maximum(k - NH, 0), 0)),  # W_dec^T chunk
                pl.BlockSpec((1, Fp), lambda i, k: (0, 0)),                        # b_dec
            ],
            out_specs=[
                pl.BlockSpec((tb, Fp), lambda i, k: (i, 0)),                       # xhat
                pl.BlockSpec((tb, th), lambda i, k: (i, jnp.maximum(k - NH, 0))),  # f chunk
            ],
            scratch_shapes=[
                pltpu.VMEM((NH, tb, th), jnp.float32),   # full `a` row block (resident)
                pltpu.VMEM((tb, 1), jnp.float32),        # per-row K-th largest value
                pltpu.VMEM((tb, Fp), jnp.float32),       # xhat f32 accumulator
            ],
        ),
        compiler_params=pltpu.CompilerParams(
            dimension_semantics=("parallel", "arbitrary"),
            vmem_limit_bytes=int(vmem_limit_bytes)),
    )(x_p, wenc_t, benc_p, wdec_t, bdec_p)

    return xhat_p[:B, :F], f_p[:B, :H]


def _reference(x, w_enc, b_enc, w_dec, b_dec, K):
    """Pure-JAX reference mirroring the PyTorch module."""
    hp = jax.lax.Precision.HIGHEST
    xbar = x - b_dec[None, :]
    a = jnp.dot(xbar, w_enc.T, precision=hp) + b_enc[None, :]
    vals, idx = jax.lax.top_k(a, K)
    f = jnp.zeros_like(a)
    f = jax.vmap(lambda fr, ir, vr: fr.at[ir].set(jnp.maximum(vr, 0.0)))(f, idx, vals)
    xhat = jnp.dot(f, w_dec.T, precision=hp) + b_dec[None, :]
    return xhat, f


def _run_case(B, F_dim, expand, K, **kw):
    H = F_dim * expand
    key = jax.random.fold_in(jax.random.PRNGKey(0), B * 100003 + F_dim * 131 + K)
    ks = jax.random.split(key, 5)
    x = jax.random.normal(ks[0], (B, F_dim), dtype=jnp.float32)
    w_enc = jax.random.normal(ks[1], (H, F_dim), dtype=jnp.float32) * 0.1
    b_enc = jax.random.normal(ks[2], (H,), dtype=jnp.float32) * 0.01
    w_dec = jax.random.normal(ks[3], (F_dim, H), dtype=jnp.float32) * 0.1
    b_dec = jax.random.normal(ks[4], (F_dim,), dtype=jnp.float32) * 0.01

    xhat, f = topk_sae_forward(x, w_enc, b_enc, w_dec, b_dec, K, **kw)
    jax.block_until_ready((xhat, f))

    xhat_r, f_r = _reference(x, w_enc, b_enc, w_dec, b_dec, K)
    assert xhat.shape == (B, F_dim) and f.shape == (B, H)
    assert jnp.allclose(xhat, xhat_r, atol=1e-3, rtol=1e-3), "xhat mismatch"
    assert jnp.allclose(f, f_r, atol=1e-3, rtol=1e-3), "f mismatch"


if __name__ == "__main__":
    # 1) aligned small shapes, small K -> iterated-max threshold path, single H chunk
    _run_case(B=16, F_dim=128, expand=4, K=4)
    # 2) unaligned B/F/H (padding path), multiple batch tiles and H chunks,
    #    large K -> fixed-cost radix threshold path
    _run_case(B=20, F_dim=96, expand=3, K=32, tile_b=8, tile_h=128)
    print("KERNEL_OK")
</pallas_src>

<mosaic_0001>
module attributes {stable_mosaic.version = 11 : i64} {
  func.func @_topk_sae_kernel(%arg0: i32, %arg1: i32, %arg2: memref<16x128xf32, #tpu.memory_space<vmem>>, %arg3: memref<128x512xf32, #tpu.memory_space<vmem>>, %arg4: memref<1x512xf32, #tpu.memory_space<vmem>>, %arg5: memref<512x128xf32, #tpu.memory_space<vmem>>, %arg6: memref<1x128xf32, #tpu.memory_space<vmem>>, %arg7: memref<16x128xf32, #tpu.memory_space<vmem>>, %arg8: memref<16x512xf32, #tpu.memory_space<vmem>>, %arg9: memref<1x16x512xf32, #tpu.memory_space<vmem>>, %arg10: memref<16x1xf32, #tpu.memory_space<vmem>>, %arg11: memref<16x128xf32, #tpu.memory_space<vmem>>) attributes {dimension_semantics = [#tpu.dimension_semantics<parallel>, #tpu.dimension_semantics<arbitrary>], iteration_bounds = array<i64: 1, 2>, scalar_prefetch = 0 : i64, scratch_operands = 3 : i64, tpu.core_type = #tpu.core_type<tc>, window_params = [{transform_indices = @transform_0, window_bounds = array<i64: 16, 128>}, {transform_indices = @transform_1, window_bounds = array<i64: 128, 512>}, {transform_indices = @transform_2, window_bounds = array<i64: 1, 512>}, {transform_indices = @transform_3, window_bounds = array<i64: 512, 128>}, {pipeline_mode = #tpu.pipeline_mode<synchronous>, transform_indices = @transform_4, window_bounds = array<i64: 1, 128>}, {transform_indices = @transform_5, window_bounds = array<i64: 16, 128>}, {transform_indices = @transform_6, window_bounds = array<i64: 16, 512>}]} {
    %c1_i32 = arith.constant 1 : i32
    %0 = arith.cmpi slt, %arg1, %c1_i32 : i32
    %1 = arith.extui %0 : i1 to i32
    %c0_i32 = arith.constant 0 : i32
    %2 = arith.cmpi ne, %1, %c0_i32 : i32
    scf.if %2 {
      %c0 = arith.constant 0 : index
      %c0_6 = arith.constant 0 : index
      %12 = vector.load %arg2[%c0, %c0_6] : memref<16x128xf32, #tpu.memory_space<vmem>>, vector<16x128xf32>
      %c0_7 = arith.constant 0 : index
      %c0_8 = arith.constant 0 : index
      %13 = vector.load %arg6[%c0_7, %c0_8] : memref<1x128xf32, #tpu.memory_space<vmem>>, vector<1x128xf32>
      %14 = vector.broadcast %13 : vector<1x128xf32> to vector<16x128xf32>
      %15 = arith.subf %12, %14 : vector<16x128xf32>
      %c0_9 = arith.constant 0 : index
      %c0_10 = arith.constant 0 : index
      %16 = vector.load %arg3[%c0_9, %c0_10] : memref<128x512xf32, #tpu.memory_space<vmem>>, vector<128x512xf32>
      %cst = arith.constant dense<0.000000e+00> : vector<16x512xf32>
      %17 = tpu.matmul %15, %16, %cst {dimension_numbers = #tpu.dot_dimension_numbers<[1], [0], [0], [1], [0, 0, 1, 1], [], []>} : vector<16x128xf32>, vector<128x512xf32>, vector<16x512xf32> -> vector<16x512xf32>
      %c0_11 = arith.constant 0 : index
      %c0_12 = arith.constant 0 : index
      %18 = vector.load %arg4[%c0_11, %c0_12] : memref<1x512xf32, #tpu.memory_space<vmem>>, vector<1x512xf32>
      %19 = vector.broadcast %18 : vector<1x512xf32> to vector<16x512xf32>
      %20 = arith.addf %17, %19 : vector<16x512xf32>
      %21 = arith.index_cast %arg1 : i32 to index
      %c0_13 = arith.constant 0 : index
      %c0_14 = arith.constant 0 : index
      %22 = vector.load %arg9[%21, %c0_13, %c0_14] : memref<1x16x512xf32, #tpu.memory_space<vmem>>, vector<1x16x512xf32>
      %23 = vector.shape_cast %22 : vector<1x16x512xf32> to vector<16x512xf32>
      %24 = vector.shape_cast %20 : vector<16x512xf32> to vector<1x16x512xf32>
      tpu.vector_store %arg9[%21, %c0_13, %c0_14], %24 {strides = array<i32>} : memref<1x16x512xf32, #tpu.memory_space<vmem>>, vector<1x16x512xf32>,
    } else {
    }
    %c1_i32_0 = arith.constant 1 : i32
    %3 = arith.cmpi eq, %arg1, %c1_i32_0 : i32
    %4 = arith.extui %3 : i1 to i32
    %c0_i32_1 = arith.constant 0 : i32
    %5 = arith.cmpi ne, %4, %c0_i32_1 : i32
    scf.if %5 {
      %c0 = arith.constant 0 : index
      %c0_6 = arith.constant 0 : index
      %c0_7 = arith.constant 0 : index
      %12 = vector.load %arg9[%c0, %c0_6, %c0_7] : memref<1x16x512xf32, #tpu.memory_space<vmem>>, vector<1x16x512xf32>
      %cst = arith.constant dense<0xFF800000> : vector<16x512xf32>
      %13 = vector.multi_reduction <maximumf>, %12, %cst [0] : vector<1x16x512xf32> to vector<16x512xf32>
      %14 = vector.shape_cast %13 : vector<16x512xf32> to vector<1x16x512xf32>
      %cst_8 = arith.constant dense<0xFF800000> : vector<1x16xf32>
      %15 = vector.multi_reduction <maximumf>, %14, %cst_8 [2] : vector<1x16x512xf32> to vector<1x16xf32>
      %16 = vector.shape_cast %15 : vector<1x16xf32> to vector<1x16x1xf32>
      %17 = vector.broadcast %16 : vector<1x16x1xf32> to vector<1x16x512xf32>
      %18 = arith.cmpf oge, %12, %17 : vector<1x16x512xf32>
      %cst_9 = arith.constant 0xFF800000 : f32
      %19 = vector.broadcast %cst_9 : f32 to vector<1x16x512xf32>
      %20 = arith.select %18, %19, %12 : vector<1x16x512xi1>, vector<1x16x512xf32>
      %cst_10 = arith.constant dense<0xFF800000> : vector<16x512xf32>
      %21 = vector.multi_reduction <maximumf>, %20, %cst_10 [0] : vector<1x16x512xf32> to vector<16x512xf32>
      %22 = vector.shape_cast %21 : vector<16x512xf32> to vector<1x16x512xf32>
      %cst_11 = arith.constant dense<0xFF800000> : vector<1x16xf32>
      %23 = vector.multi_reduction <maximumf>, %22, %cst_11 [2] : vector<1x16x512xf32> to vector<1x16xf32>
      %24 = vector.shape_cast %23 : vector<1x16xf32> to vector<1x16x1xf32>
      %25 = vector.broadcast %24 : vector<1x16x1xf32> to vector<1x16x512xf32>
      %26 = arith.cmpf oge, %20, %25 : vector<1x16x512xf32>
      %cst_12 = arith.constant 0xFF800000 : f32
      %27 = vector.broadcast %cst_12 : f32 to vector<1x16x512xf32>
      %28 = arith.select %26, %27, %20 : vector<1x16x512xi1>, vector<1x16x512xf32>
      %cst_13 = arith.constant dense<0xFF800000> : vector<16x512xf32>
      %29 = vector.multi_reduction <maximumf>, %28, %cst_13 [0] : vector<1x16x512xf32> to vector<16x512xf32>
      %30 = vector.shape_cast %29 : vector<16x512xf32> to vector<1x16x512xf32>
      %cst_14 = arith.constant dense<0xFF800000> : vector<1x16xf32>
      %31 = vector.multi_reduction <maximumf>, %30, %cst_14 [2] : vector<1x16x512xf32> to vector<1x16xf32>
      %32 = vector.shape_cast %31 : vector<1x16xf32> to vector<1x16x1xf32>
      %33 = vector.broadcast %32 : vector<1x16x1xf32> to vector<1x16x512xf32>
      %34 = arith.cmpf oge, %28, %33 : vector<1x16x512xf32>
      %cst_15 = arith.constant 0xFF800000 : f32
      %35 = vector.broadcast %cst_15 : f32 to vector<1x16x512xf32>
      %36 = arith.select %34, %35, %28 : vector<1x16x512xi1>, vector<1x16x512xf32>
      %cst_16 = arith.constant dense<0xFF800000> : vector<16x512xf32>
      %37 = vector.multi_reduction <maximumf>, %36, %cst_16 [0] : vector<1x16x512xf32> to vector<16x512xf32>
      %38 = vector.shape_cast %37 : vector<16x512xf32> to vector<1x16x512xf32>
      %cst_17 = arith.constant dense<0xFF800000> : vector<1x16xf32>
      %39 = vector.multi_reduction <maximumf>, %38, %cst_17 [2] : vector<1x16x512xf32> to vector<1x16xf32>
      %40 = vector.shape_cast %39 : vector<1x16xf32> to vector<1x16x1xf32>
      %41 = vector.shape_cast %40 : vector<1x16x1xf32> to vector<16x1xf32>
      %c0_18 = arith.constant 0 : index
      %c0_19 = arith.constant 0 : index
      %42 = vector.load %arg10[%c0_18, %c0_19] : memref<16x1xf32, #tpu.memory_space<vmem>>, vector<16x1xf32>
      tpu.vector_store %arg10[%c0_18, %c0_19], %41 {strides = array<i32>} : memref<16x1xf32, #tpu.memory_space<vmem>>, vector<16x1xf32>,
      %cst_20 = arith.constant 0.000000e+00 : f32
      %43 = vector.broadcast %cst_20 : f32 to vector<16x128xf32>
      %c0_21 = arith.constant 0 : index
      %c0_22 = arith.constant 0 : index
      %44 = vector.load %arg11[%c0_21, %c0_22] : memref<16x128xf32, #tpu.memory_space<vmem>>, vector<16x128xf32>
      tpu.vector_store %arg11[%c0_21, %c0_22], %43 {strides = array<i32>} : memref<16x128xf32, #tpu.memory_space<vmem>>, vector<16x128xf32>,
    } else {
    }
    %c1_i32_2 = arith.constant 1 : i32
    %6 = arith.cmpi sge, %arg1, %c1_i32_2 : i32
    %7 = arith.extui %6 : i1 to i32
    %c0_i32_3 = arith.constant 0 : i32
    %8 = arith.cmpi ne, %7, %c0_i32_3 : i32
    scf.if %8 {
      %c1_i32_6 = arith.constant 1 : i32
      %12 = arith.subi %arg1, %c1_i32_6 : i32
      %13 = arith.index_cast %12 : i32 to index
      %c0 = arith.constant 0 : index
      %c0_7 = arith.constant 0 : index
      %14 = vector.load %arg9[%13, %c0, %c0_7] : memref<1x16x512xf32, #tpu.memory_space<vmem>>, vector<1x16x512xf32>
      %15 = vector.shape_cast %14 : vector<1x16x512xf32> to vector<16x512xf32>
      %c0_8 = arith.constant 0 : index
      %c0_9 = arith.constant 0 : index
      %16 = vector.load %arg10[%c0_8, %c0_9] : memref<16x1xf32, #tpu.memory_space<vmem>>, vector<16x1xf32>
      %17 = vector.broadcast %16 : vector<16x1xf32> to vector<16x512xf32>
      %18 = arith.cmpf oge, %15, %17 : vector<16x512xf32>
      %cst = arith.constant 0.000000e+00 : f32
      %19 = vector.broadcast %cst : f32 to vector<16x512xf32>
      %20 = arith.maximumf %15, %19 : vector<16x512xf32>
      %cst_10 = arith.constant 0.000000e+00 : f32
      %21 = vector.broadcast %cst_10 : f32 to vector<16x512xf32>
      %22 = arith.select %18, %20, %21 : vector<16x512xi1>, vector<16x512xf32>
      %c0_11 = arith.constant 0 : index
      %c0_12 = arith.constant 0 : index
      %23 = vector.load %arg8[%c0_11, %c0_12] : memref<16x512xf32, #tpu.memory_space<vmem>>, vector<16x512xf32>
      tpu.vector_store %arg8[%c0_11, %c0_12], %22 {strides = array<i32>} : memref<16x512xf32, #tpu.memory_space<vmem>>, vector<16x512xf32>,
      %c0_13 = arith.constant 0 : index
      %c0_14 = arith.constant 0 : index
      %24 = vector.load %arg11[%c0_13, %c0_14] : memref<16x128xf32, #tpu.memory_space<vmem>>, vector<16x128xf32>
      %c0_15 = arith.constant 0 : index
      %c0_16 = arith.constant 0 : index
      %25 = vector.load %arg5[%c0_15, %c0_16] : memref<512x128xf32, #tpu.memory_space<vmem>>, vector<512x128xf32>
      %cst_17 = arith.constant dense<0.000000e+00> : vector<16x128xf32>
      %26 = tpu.matmul %22, %25, %cst_17 {dimension_numbers = #tpu.dot_dimension_numbers<[1], [0], [0], [1], [0, 0, 1, 1], [], []>} : vector<16x512xf32>, vector<512x128xf32>, vector<16x128xf32> -> vector<16x128xf32>
      %27 = arith.addf %24, %26 : vector<16x128xf32>
      %c0_18 = arith.constant 0 : index
      %c0_19 = arith.constant 0 : index
      %28 = vector.load %arg11[%c0_18, %c0_19] : memref<16x128xf32, #tpu.memory_space<vmem>>, vector<16x128xf32>
      tpu.vector_store %arg11[%c0_18, %c0_19], %27 {strides = array<i32>} : memref<16x128xf32, #tpu.memory_space<vmem>>, vector<16x128xf32>,
    } else {
    }
    %c1_i32_4 = arith.constant 1 : i32
    %9 = arith.cmpi eq, %arg1, %c1_i32_4 : i32
    %10 = arith.extui %9 : i1 to i32
    %c0_i32_5 = arith.constant 0 : i32
    %11 = arith.cmpi ne, %10, %c0_i32_5 : i32
    scf.if %11 {
      %c0 = arith.constant 0 : index
      %c0_6 = arith.constant 0 : index
      %12 = vector.load %arg11[%c0, %c0_6] : memref<16x128xf32, #tpu.memory_space<vmem>>, vector<16x128xf32>
      %c0_7 = arith.constant 0 : index
      %c0_8 = arith.constant 0 : index
      %13 = vector.load %arg6[%c0_7, %c0_8] : memref<1x128xf32, #tpu.memory_space<vmem>>, vector<1x128xf32>
      %14 = vector.broadcast %13 : vector<1x128xf32> to vector<16x128xf32>
      %15 = arith.addf %12, %14 : vector<16x128xf32>
      %c0_9 = arith.constant 0 : index
      %c0_10 = arith.constant 0 : index
      %16 = vector.load %arg7[%c0_9, %c0_10] : memref<16x128xf32, #tpu.memory_space<vmem>>, vector<16x128xf32>
      tpu.vector_store %arg7[%c0_9, %c0_10], %15 {strides = array<i32>} : memref<16x128xf32, #tpu.memory_space<vmem>>, vector<16x128xf32>,
    } else {
    }
    return
  }
  func.func @transform_0(%arg0: i32, %arg1: i32) -> (i32, i32) {
    %c0_i32 = arith.constant 0 : i32
    %c0_i32_0 = arith.constant 0 : i32
    return %arg0, %c0_i32 : i32, i32
  }
  func.func @transform_1(%arg0: i32, %arg1: i32) -> (i32, i32) {
    %c0_i32 = arith.constant 0 : i32
    %0 = arith.minsi %arg1, %c0_i32 : i32
    %c0_i32_0 = arith.constant 0 : i32
    %c0_i32_1 = arith.constant 0 : i32
    return %c0_i32_0, %0 : i32, i32
  }
  func.func @transform_2(%arg0: i32, %arg1: i32) -> (i32, i32) {
    %c0_i32 = arith.constant 0 : i32
    %0 = arith.minsi %arg1, %c0_i32 : i32
    %c0_i32_0 = arith.constant 0 : i32
    %c0_i32_1 = arith.constant 0 : i32
    return %c0_i32_0, %0 : i32, i32
  }
  func.func @transform_3(%arg0: i32, %arg1: i32) -> (i32, i32) {
    %c1_i32 = arith.constant 1 : i32
    %0 = arith.subi %arg1, %c1_i32 : i32
    %c0_i32 = arith.constant 0 : i32
    %1 = arith.maxsi %0, %c0_i32 : i32
    %c0_i32_0 = arith.constant 0 : i32
    %c0_i32_1 = arith.constant 0 : i32
    return %1, %c0_i32_0 : i32, i32
  }
  func.func @transform_4(%arg0: i32, %arg1: i32) -> (i32, i32) {
    %c0_i32 = arith.constant 0 : i32
    %c0_i32_0 = arith.constant 0 : i32
    %c0_i32_1 = arith.constant 0 : i32
    return %c0_i32, %c0_i32_0 : i32, i32
  }
  func.func @transform_5(%arg0: i32, %arg1: i32) -> (i32, i32) {
    %c0_i32 = arith.constant 0 : i32
    %c0_i32_0 = arith.constant 0 : i32
    return %arg0, %c0_i32 : i32, i32
  }
  func.func @transform_6(%arg0: i32, %arg1: i32) -> (i32, i32) {
    %c1_i32 = arith.constant 1 : i32
    %0 = arith.subi %arg1, %c1_i32 : i32
    %c0_i32 = arith.constant 0 : i32
    %1 = arith.maxsi %0, %c0_i32 : i32
    %c0_i32_0 = arith.constant 0 : i32
    return %arg0, %1 : i32, i32
  }
}

</mosaic_0001>

<bundles_post_ra>
// kernel: tpu_custom_call.1
= control target key start
LH: loop header
LB: loop body
LE: loop exit
PB: predicated region body
PF: predicated region fallthrough
CT: control target
= control target key end

     0   :  { %s2369_s0 = inlined_call_operand.hbm [shape: f32[16,128], index: 0, kind: input, shape index: {}]   ;;  %s2370_s1 = inlined_call_operand.hbm [shape: f32[128,512], index: 1, kind: input, shape index: {}]   ;;  %s2371_s2 = inlined_call_operand.vmem [shape: f32[1,512], index: 2, kind: input, shape index: {}]   ;;  %s2372_s3 = inlined_call_operand.hbm [shape: f32[512,128], index: 3, kind: input, shape index: {}]   ;;  %s2373_s4 = inlined_call_operand.vmem [shape: f32[1,128], index: 4, kind: input, shape index: {}]   ;;  %s2374_s5 = inlined_call_operand.hbm [shape: f32[16,128], index: 5, kind: output, shape index: {0}]   ;;  %s2375_s6 = inlined_call_operand.hbm [shape: f32[16,512], index: 6, kind: output, shape index: {1}]  }
   0x1   :  { %2386 = sst [smem:[#allocation19_spill]] %s2369_s0 }
   0x2   :  { %12 = vsyncpa [#allocation6], 0 }
   0x3   :  { %13 = vsyncpa [#allocation9], 0 }
   0x4   :  { %15 = vsyncpa [#allocation9 + $0x1], 0 }
   0x5   :  { %16 = vsyncpa [#allocation7], 0 }
   0x6   :  { %17 = vsyncpa [#allocation13], 0 }
   0x7   :  { %19 = vsyncpa [#allocation13 + $0x1], 0  ;;  %s1923_s21 = smov 0   ;;  %s1925_s22 = smov 0  }
   0x8   :  { %s1927_s23 = smov 0   ;;  %s1929_s24 = smov 0  }
   0x9   :  { %s1931_s25 = smov 0   ;;  %s1933_s26 = smov 0  }
   0xa   :  { %s1935_s27 = smov 0  }
   0xb LB: > { %s34_s28 = sadd.s32 1, %s1866_s26  ;;  %p1842_p1 = scmp.ne.s32.totalorder %s1858_s24, 0  ;;  %s1870_s27 = sphi %s1935_s27, %s25_s27   ;;  %s1866_s26 = sphi %s1933_s26, %s2418_s26   ;;  %s1862_s25 = sphi %s1931_s25, %s2417_s25   ;;  %s1858_s24 = sphi %s1929_s24, %s2359_s24   ;;  %s1854_s23 = sphi %s1927_s23, %s2416_s23   ;;  %s1850_s22 = sphi %s1925_s22, %s2354_s22   ;;  %s1846_s21 = sphi %s1923_s21, %s2415_s21  }
   0xc   : > { %p35_p0 = scmp.ge.s32.totalorder %s34_s28, 2  ;;  %p2377_p2 = scmp.eq.s32.totalorder %s1870_s27, 0 }
   0xd   : > { %p2376_p5 = scmp.lt.s32.totalorder %s1870_s27, 2  ;;  %s273_s29 = sand.u32 1, %s1870_s27  }
   0xe   : > { %s2420_s28 = smov (%p35_p0, %s34_s28), 0  ;;  %p83_p4 = por %p1842_p1, %p2377_p2 }
   0xf   : > { %s1872_s30 = smov [#allocation8]   ;;  %s1976_s9 = scalar_lea.sflag [#allocation9], %s273_s29 }
  0x10   : > { %s286_s7 = sshll.u32 %s1872_s30, 4  ;;  %p1972_p6 = pnand %p2376_p5, %p83_p4  ;;  %s1968_s7 = int_to_ptr.vmem [resolvable:$true] %s286_s7 }
  0x11   : > { %s1644_s12 = scalar_lea.hbm %s2370_s1, 8192 }
  0x12   : > { %p1645_p7 = scmp.ne.s32.totalorder %s2370_s1, %s1644_s12  ;;  %p1646_p8 = pneg %p1972_p6 }
  0x13   : > { %p1651_p11 = scmp.lt.u32.totalorder %s1644_s12, %s1644_s12  ;;  %p1653_p12 = scmp.lt.u32.totalorder %s1644_s12, %s2370_s1 }
  0x14   : > { %p1647_p9 = pnand %p1646_p8, %p1645_p7 }
  0x15   : > { %p1654_p13 = por %p1653_p12, %p1651_p11 }
  0x16   : > { %p1648_p10 = pneg %p1647_p9 }
  0x18   : > { %p1655_p0 = pnand %p1654_p13, %p1648_p10 }
  0x1a   : > { %1658 = shalt.err (!%p1655_p0)
}
  0x1b   : > { %s1659_s17 = scalar_lea.vmem %s1968_s7, 8192  ;;  %s1666_s18 = scalar_lea.vmem %s1968_s7, 16384 }
  0x1c   : > { %p1660_p1 = scmp.ne.s32.totalorder %s1968_s7, %s1659_s17  ;;  %p1667_p7 = scmp.lt.s32.totalorder %s1968_s7, %s1968_s7 }
  0x1d   : > { %p1668_p9 = scmp.lt.s32.totalorder %s1666_s18, %s1659_s17 }
  0x1e   : > { %p1662_p4 = pnand %p1660_p1, %p1646_p8 }
  0x1f   : > { %p1669_p5 = por %p1668_p9, %p1667_p7 }
  0x20   : > { %p1663_p3 = pneg %p1662_p4 }
  0x22   : > { %p1670_p2 = pnand %p1669_p5, %p1663_p3 }
  0x24   : > { %1673 = shalt.err (!%p1670_p2)
}
  0x25   : > { %s1873_s19 = smov 512   ;;  %s1874_s20 = smov 32  }
  0x26   : > { %1544 = dma.hbm_to_vmem [thread:$0]  (!%p1972_p6), %s2370_s1, 8192, %s1968_s7, %s1976_s9, %s1873_s19, %s1873_s19, %s1874_s20  }
  0x27   : > { %s2002_s10 = sadd.s32 4294967295, %s1870_s27   ;;  %s1266_s11 = sadd.s32 4294967294, %s1870_s27  }
  0x28   : > { %p87_p2 = scmp.ne.s32.totalorder %s1858_s24, %s1854_s23  ;;  %p2378_p3 = scmp.eq.s32.totalorder %s2002_s10, 0 }
  0x29   : > { %p149_p5 = scmp.ne.s32.totalorder %s1850_s22, %s1846_s21  ;;  %p234_p10 = scmp.eq.s32.totalorder %s1266_s11, 1 }
  0x2a   : > { %p2013_p11 = por %p2378_p3, %p87_p2  ;;  %p1271_p13 = scmp.ge.s32.totalorder %s1870_s27, 1 }
  0x2b   : > { %p2019_p6 = por %p149_p5, %p2378_p3  ;;  %p2023_p12 = por %p234_p10, %p149_p5 }
  0x2c   : > { %s2388_s8 = scalar_select %p2013_p11, 1, 0 }
  0x2d   : > { %s2389_s7 = scalar_select %p2019_p6, 1, 0 }
  0x2e   : > { %s2390_s12 = scalar_select %p2023_p12, 1, 0 }
  0x2f   : > { %p241_p0 = scmp.lt.s32.totalorder %s1870_s27, 3  ;;  %s1875_s13 = smov [#allocation5]  }
  0x30   : > { %s256_s14 = sshll.u32 %s1875_s13, 4  ;;  %s2393_s0 = sld [smem:[#allocation19_spill]]  ;;  %s257_s14 = int_to_ptr.vmem [resolvable:$true] %s256_s14 }
  0x31   : > { %p2029_p1 = pnand %p1271_p13, %p241_p0 }
  0x33   : > { %s2391_s23 = scalar_select %p2029_p1, 1, 0 }
  0x34   : > { %p1537_p4 = pneg %p2029_p1 }
  0x36   : > { %p2037_p7 = pnand %p1537_p4, %p2378_p3  ;;  %s1674_s18 = scalar_lea.hbm %s2393_s0, 256 }
  0x37   : > { %p1675_p9 = scmp.ne.s32.totalorder %s2393_s0, %s1674_s18  ;;  %p1681_p13 = scmp.lt.u32.totalorder %s1674_s18, %s2393_s0 }
  0x38   : > { %p1676_p2 = pneg %p2037_p7 }
  0x3a   : > { %p1677_p5 = pnand %p1676_p2, %p1675_p9 }
  0x3c   : > { %p1678_p10 = pneg %p1677_p5 }
  0x3e   : > { %p1683_p0 = pnand %p1681_p13, %p1678_p10 }
  0x40   : > { %1686 = shalt.err (!%p1683_p0)
}
  0x41   : > { %s1687_s11 = scalar_lea.vmem %s257_s14, 256  ;;  %p1695_p12 = scmp.lt.s32.totalorder %s257_s14, %s257_s14 }
  0x42   : > { %p1688_p4 = scmp.ne.s32.totalorder %s257_s14, %s1687_s11  ;;  %p1696_p6 = scmp.lt.s32.totalorder %s1687_s11, %s1687_s11 }
  0x44   : > { %p1690_p3 = pnand %p1688_p4, %p1676_p2  ;;  %p1697_p11 = por %p1696_p6, %p1695_p12 }
  0x46   : > { %p1691_p8 = pneg %p1690_p3 }
  0x48   : > { %p1698_p1 = pnand %p1697_p11, %p1691_p8 }
  0x4a   : > { %1701 = shalt.err (!%p1698_p1)
}
  0x4b   : > { %s2382_s13 = smov 128   ;;  %s2383_s16 = smov 8  }
  0x4c   : > { %1540 = dma.hbm_to_vmem [thread:$0]  (!%p2037_p7), %s2393_s0, 256, %s257_s14, [#allocation6], %s2382_s13, %s2382_s13, %s2383_s16  }
  0x4d   : > { %p1843_p3 = scmp.ne.s32.totalorder %s1850_s22, 0  ;;  %p2394_p9 = scmp.eq.s32.totalorder %s1870_s27, 0 }
  0x4e   : > { %p2395_p8 = scmp.eq.s32.totalorder %s2002_s10, 1  ;;  %s1878_s20 = smov [#allocation10]  }
  0x4f   : > { %p145_p6 = por %p1843_p3, %p2394_p9  ;;  %s322_s29 = sshll.u32 %s1878_s20, 4  ;;  %s323_s29 = int_to_ptr.vmem [resolvable:$true] %s322_s29 }
  0x50   : > { %p2065_p11 = por %p1843_p3, %p2395_p8  ;;  %p2397_p12 = scmp.lt.s32.totalorder %s1870_s27, 2 }
  0x51   : > { %s1702_s14 = scalar_lea.hbm %s2372_s3, 8192 }
  0x52   : > { %s2396_s19 = scalar_select %p2065_p11, 1, 0 }
  0x53   : > { %p2071_p1 = pnand %p2397_p12, %p145_p6  ;;  %p1703_p7 = scmp.ne.s32.totalorder %s2372_s3, %s1702_s14 }
  0x54   : > { %p1709_p13 = scmp.lt.u32.totalorder %s1702_s14, %s1702_s14  ;;  %p1711_p0 = scmp.lt.u32.totalorder %s1702_s14, %s2372_s3 }
  0x55   : > { %s2398_s15 = scalar_select %p2071_p1, 1, 0 }
  0x56   : > { %p1704_p2 = pneg %p2071_p1  ;;  %p1712_p4 = por %p1711_p0, %p1709_p13 }
  0x58   : > { %p1705_p5 = pnand %p1704_p2, %p1703_p7 }
  0x5a   : > { %p1706_p10 = pneg %p1705_p5 }
  0x5c   : > { %p1713_p3 = pnand %p1712_p4, %p1706_p10 }
  0x5e   : > { %1716 = shalt.err (!%p1713_p3)
}
  0x5f   : > { %s1717_s16 = scalar_lea.vmem %s323_s29, 8192  ;;  %s1724_s30 = scalar_lea.vmem %s323_s29, 16384 }
  0x60   : > { %p1718_p9 = scmp.ne.s32.totalorder %s323_s29, %s1717_s16  ;;  %p1725_p12 = scmp.lt.s32.totalorder %s323_s29, %s323_s29 }
  0x61   : > { %p1726_p11 = scmp.lt.s32.totalorder %s1724_s30, %s1717_s16 }
  0x62   : > { %p1720_p6 = pnand %p1718_p9, %p1704_p2 }
  0x63   : > { %p1727_p1 = por %p1726_p11, %p1725_p12 }
  0x64   : > { %p1721_p8 = pneg %p1720_p6 }
  0x66   : > { %p1728_p7 = pnand %p1727_p1, %p1721_p8 }
  0x68   : > { %1731 = shalt.err (!%p1728_p7)
}
  0x69   : > { %p2399_p5 = scmp.ne.s32.totalorder %s2398_s15, 0  ;;  %s2400_s11 = smov 8  }
  0x6a   : > { %s2401_s17 = smov 128   ;;  %p2402_p10 = scmp.ne.s32.totalorder %s2391_s23, 0 }
  0x6b   : > { %1547 = dma.hbm_to_vmem [thread:$0]  (!%p2399_p5), %s2372_s3, 8192, %s323_s29, %s1976_s9, %s2401_s17, %s2401_s17, %s2400_s11  }
  0x6c   : > { %334 = sbr.rel (%p2402_p10) target bundleno = 1415 (0x587), region = 40  ;;  %p2403_p2 = scmp.eq.s32.totalorder (!%p2402_p10), %s2002_s10, 0 }
  0x73   : > { %1823 = dma.done.wait (%p2403_p2), [#allocation6], 256   ;;  %p2404_p11 = pmov %p2403_p2 }
  0x74   : > { %s340_s16 = sand.u32 1, %s2002_s10   ;;  %s342_s15 = sand.u32 1, %s1858_s24  }
  0x75   : > { %1825 = vsyncadd (%p2404_p11), [#allocation6], 4294967040  ;;  %s1283_s18 = sshll.u32 %s342_s15, 9  ;;  %s341_s20 = scalar_lea.sflag [#allocation9], %s340_s16 }
  0x76   : > { %s2103_s30 = scalar_lea.vmem [#allocation8], %s1283_s18  ;;  %p2405_p1 = scmp.ne.s32.totalorder %s2388_s8, 0 }
  0x78   : > { %1827 = dma.done.wait (%p2405_p1), %s341_s20, 8192  }
  0x79   : > { %1829 = vsyncadd (%p2405_p1), %s341_s20, 4294959104  ;;  %s2110_s9 = sand.u32 1, %s1850_s22   ;;  %p2406_p13 = scmp.ne.s32.totalorder %s2389_s7, 0 }
  0x7a   : > { %s1284_s23 = sshll.u32 %s2110_s9, 9 }
  0x7b   : > { %s2113_s29 = scalar_lea.vmem [#allocation10], %s1284_s23 }
  0x7c   : > { %1831 = dma.done.wait (%p2406_p13), %s341_s20, 8192  }
  0x7d   : > { %1833 = vsyncadd (%p2406_p13), %s341_s20, 4294959104  ;;  %s1285_s11 = sshll.u32 %s2110_s9, 6  ;;  %p397_p0 = scmp.lt.s32.totalorder %s1862_s25, 0 }
  0x7e   : > { %s2128_s15 = scalar_lea.vmem [#allocation12], %s1285_s11  ;;  %p1287_p3 = scmp.ge.s32.totalorder %s1862_s25, 1 }
  0x7f   : > { %s398_s8 = scalar_select %p397_p0, %s1862_s25, 0 }
  0x80   : > { %419 = sbr.rel (%p1287_p3) target bundleno = 385 (0x181), region = 56  ;;  %v432_v0 = vld [vmem:[%s2103_s30 + $0x8] sm:$0xff] (!%p1287_p3)  ;;  %v434_v2 = vld [vmem:[%s2103_s30 + $0x18] sm:$0xff] (!%p1287_p3)  ;;  %v431_v5 = vld [vmem:[%s2103_s30] sm:$0xff] (!%p1287_p3)  ;;  %v1879_v7 = vmov (!%p1287_p3), 0.0   ;;  %s1316_s23 = sshll.u32 (!%p1287_p3), %s1862_s25, 6 }
  0x81   : > { %s1286_s17 = sshll.u32 %s398_s8, 2  ;;  %v436_v1 = vld [vmem:[%s2103_s30 + $0x28] sm:$0xff] (!%p1287_p3)  ;;  %v438_v4 = vld [vmem:[%s2103_s30 + $0x38] sm:$0xff] (!%p1287_p3)  ;;  %v435_v6 = vld [vmem:[%s2103_s30 + $0x20] sm:$0xff] (!%p1287_p3)  ;;  %581 = vmatprep.mubr.f32.mxu0 (!%p1287_p3), %v1879_v7  ;;  %658 = vmatprep.mubr.f32.mxu1 (!%p1287_p3), %v1879_v7  ;;  %s673_s11 = scalar_lea.vmem (!%p1287_p3), [#allocation2], %s1316_s23 }
  0x82   : > { %p400_p4 = scmp.lt.s32.totalorder %s1286_s17, 3  ;;  %v1395_v3 = vpack.c.bf16 (!%p1287_p3), %v436_v1, %v432_v0  ;;  %v1427_v8 = vpack.c.bf16 (!%p1287_p3), %v438_v4, %v434_v2  ;;  %v1397_v9 = vpack.c.bf16 (!%p1287_p3), %v435_v6, %v431_v5  ;;  %v433_v10 = vld [vmem:[%s2103_s30 + $0x10] sm:$0xff] (!%p1287_p3)  ;;  %v440_v12 = vld [vmem:[%s2103_s30 + $0x48] sm:$0xff] (!%p1287_p3)  ;;  %v442_v15 = vld [vmem:[%s2103_s30 + $0x58] sm:$0xff] (!%p1287_p3) }
  0x83   : > { %v437_v11 = vld [vmem:[%s2103_s30 + $0x30] sm:$0xff] (!%p1287_p3)  ;;  %v444_v14 = vld [vmem:[%s2103_s30 + $0x68] sm:$0xff] (!%p1287_p3)  ;;  %v446_v16 = vld [vmem:[%s2103_s30 + $0x78] sm:$0xff] (!%p1287_p3) }
  0x84   : > { %s2422_s17 = smov (!%p400_p4, %s1286_s17), 3  ;;  %1396 = vmatprep.subr.bf16.mxu0 (!%p1287_p3), %v1395_v3  ;;  %v1429_v13 = vpack.c.bf16 (!%p1287_p3), %v437_v11, %v433_v10  ;;  %1428 = vmatprep.subr.bf16.mxu1 (!%p1287_p3), %v1427_v8  ;;  %v1399_v17 = vpack.c.bf16 (!%p1287_p3), %v444_v14, %v440_v12  ;;  %v1431_v18 = vpack.c.bf16 (!%p1287_p3), %v446_v16, %v442_v15  ;;  %v439_v19 = vld [vmem:[%s2103_s30 + $0x40] sm:$0xff] (!%p1287_p3)  ;;  %v441_v21 = vld [vmem:[%s2103_s30 + $0x50] sm:$0xff] (!%p1287_p3)  ;;  %v448_v24 = vld [vmem:[%s2103_s30 + $0x88] sm:$0xff] (!%p1287_p3) }
  0x85   : > { %s402_s16 = scalar_lea.vmem %s2371_s2, %s2422_s17  ;;  %1398 = vmatpush1.bf16.msra.mxu0 (!%p1287_p3), %v1397_v9  ;;  %v443_v20 = vld [vmem:[%s2103_s30 + $0x60] sm:$0xff] (!%p1287_p3)  ;;  %v445_v23 = vld [vmem:[%s2103_s30 + $0x70] sm:$0xff] (!%p1287_p3)  ;;  %v452_v25 = vld [vmem:[%s2103_s30 + $0xa8] sm:$0xff] (!%p1287_p3) }
  0x86   : > { %1430 = vmatpush1.bf16.msra.mxu1 (!%p1287_p3), %v1429_v13  ;;  %v1401_v22 = vpack.c.bf16 (!%p1287_p3), %v443_v20, %v439_v19  ;;  %1400 = vmatprep.subr.bf16.mxu0 (!%p1287_p3), %v1399_v17  ;;  %v1433_v26 = vpack.c.bf16 (!%p1287_p3), %v445_v23, %v441_v21  ;;  %v1403_v27 = vpack.c.bf16 (!%p1287_p3), %v452_v25, %v448_v24  ;;  %v450_v28 = vld [vmem:[%s2103_s30 + $0x98] sm:$0xff] (!%p1287_p3)  ;;  %v447_v30 = vld [vmem:[%s2103_s30 + $0x80] sm:$0xff] (!%p1287_p3)  ;;  %v449_v33 = vld [vmem:[%s2103_s30 + $0x90] sm:$0xff] (!%p1287_p3) }
  0x87   : > { %1432 = vmatprep.subr.bf16.mxu1 %v1431_v18  ;;  %v454_v29 = vld [vmem:[%s2103_s30 + $0xb8] sm:$0xff]  ;;  %v451_v32 = vld [vmem:[%s2103_s30 + $0xa0] sm:$0xff]  ;;  %v453_v34 = vld [vmem:[%s2103_s30 + $0xb0] sm:$0xff] }
  0x88   : > { %v1435_v31 = vpack.c.bf16 %v454_v29, %v450_v28  ;;  %v1405_v35 = vpack.c.bf16 %v451_v32, %v447_v30  ;;  %v456_v36 = vld [vmem:[%s2103_s30 + $0xc8] sm:$0xff]  ;;  %v458_v38 = vld [vmem:[%s2103_s30 + $0xd8] sm:$0xff]  ;;  %v1437_v39 = vpack.c.bf16 %v453_v34, %v449_v33  ;;  %v455_v42 = vld [vmem:[%s2103_s30 + $0xc0] sm:$0xff] }
  0x89   : > { %1402 = vmatpush1.bf16.msra.mxu0 %v1401_v22  ;;  %v460_v37 = vld [vmem:[%s2103_s30 + $0xe8] sm:$0xff]  ;;  %v462_v41 = vld [vmem:[%s2103_s30 + $0xf8] sm:$0xff]  ;;  %v459_v43 = vld [vmem:[%s2103_s30 + $0xe0] sm:$0xff] }
  0x8a   : > { %1434 = vmatpush1.bf16.msra.mxu1 %v1433_v26  ;;  %1404 = vmatprep.subr.bf16.mxu0 %v1403_v27  ;;  %v1407_v40 = vpack.c.bf16 %v460_v37, %v456_v36  ;;  %v1439_v44 = vpack.c.bf16 %v462_v41, %v458_v38  ;;  %v457_v45 = vld [vmem:[%s2103_s30 + $0xd0] sm:$0xff]  ;;  %v464_v47 = vld [vmem:[%s2103_s30 + $0x108] sm:$0xff]  ;;  %v466_v49 = vld [vmem:[%s2103_s30 + $0x118] sm:$0xff]  ;;  %v1409_v51 = vpack.c.bf16 %v459_v43, %v455_v42 }
  0x8b   : > { %1436 = vmatprep.subr.bf16.mxu1 %v1435_v31  ;;  %v461_v46 = vld [vmem:[%s2103_s30 + $0xf0] sm:$0xff]  ;;  %v468_v48 = vld [vmem:[%s2103_s30 + $0x128] sm:$0xff]  ;;  %v470_v50 = vld [vmem:[%s2103_s30 + $0x138] sm:$0xff] }
  0x8c   : > { %v1441_v52 = vpack.c.bf16 %v461_v46, %v457_v45  ;;  %v1411_v53 = vpack.c.bf16 %v468_v48, %v464_v47  ;;  %v463_v54 = vld [vmem:[%s2103_s30 + $0x100] sm:$0xff]  ;;  %v465_v56 = vld [vmem:[%s2103_s30 + $0x110] sm:$0xff]  ;;  %v1443_v57 = vpack.c.bf16 %v470_v50, %v466_v49  ;;  %v472_v59 = vld [vmem:[%s2103_s30 + $0x148] sm:$0xff] }
  0x8d   : > { %1406 = vmatpush1.bf16.msra.mxu0 %v1405_v35  ;;  %v467_v55 = vld [vmem:[%s2103_s30 + $0x120] sm:$0xff]  ;;  %v469_v58 = vld [vmem:[%s2103_s30 + $0x130] sm:$0xff]  ;;  %v476_v60 = vld [vmem:[%s2103_s30 + $0x168] sm:$0xff] }
  0x8e   : > { %1438 = vmatpush1.bf16.msra.mxu1 %v1437_v39  ;;  %1408 = vmatprep.subr.bf16.mxu0 %v1407_v40  ;;  %v474_v61 = vld [vmem:[%s2103_s30 + $0x158] sm:$0xff]  ;;  %v1413_v63 = vpack.c.bf16 %v467_v55, %v463_v54  ;;  %v1445_v0 = vpack.c.bf16 %v469_v58, %v465_v56  ;;  %v1415_v1 = vpack.c.bf16 %v476_v60, %v472_v59  ;;  %v471_v2 = vld [vmem:[%s2103_s30 + $0x140] sm:$0xff]  ;;  %v473_v4 = vld [vmem:[%s2103_s30 + $0x150] sm:$0xff]  ;;  %v497_v39 = vlaneseq }
  0x8f   : > { %1440 = vmatprep.subr.bf16.mxu1 %v1439_v44  ;;  %v478_v62 = vld [vmem:[%s2103_s30 + $0x178] sm:$0xff]  ;;  %v475_v3 = vld [vmem:[%s2103_s30 + $0x160] sm:$0xff]  ;;  %v477_v6 = vld [vmem:[%s2103_s30 + $0x170] sm:$0xff] }
  0x90   : > { %v1447_v5 = vpack.c.bf16 %v478_v62, %v474_v61  ;;  %v480_v8 = vld [vmem:[%s2103_s30 + $0x188] sm:$0xff]  ;;  %v482_v10 = vld [vmem:[%s2103_s30 + $0x198] sm:$0xff]  ;;  %v1417_v12 = vpack.c.bf16 %v475_v3, %v471_v2  ;;  %v1449_v13 = vpack.c.bf16 %v477_v6, %v473_v4  ;;  %v479_v15 = vld [vmem:[%s2103_s30 + $0x180] sm:$0xff]  ;;  %v498_v40 = vshrl.u32 %v497_v39, 7 }
  0x91   : > { %1410 = vmatpush1.bf16.msra.mxu0 %v1409_v51  ;;  %v484_v9 = vld [vmem:[%s2103_s30 + $0x1a8] sm:$0xff]  ;;  %v486_v11 = vld [vmem:[%s2103_s30 + $0x1b8] sm:$0xff]  ;;  %v483_v16 = vld [vmem:[%s2103_s30 + $0x1a0] sm:$0xff] }
  0x92   : > { %1442 = vmatpush1.bf16.msra.mxu1 %v1441_v52  ;;  %1412 = vmatprep.subr.bf16.mxu0 %v1411_v53  ;;  %v1419_v14 = vpack.c.bf16 %v484_v9, %v480_v8  ;;  %v481_v17 = vld [vmem:[%s2103_s30 + $0x190] sm:$0xff]  ;;  %v1451_v18 = vpack.c.bf16 %v486_v11, %v482_v10  ;;  %v488_v20 = vld [vmem:[%s2103_s30 + $0x1c8] sm:$0xff]  ;;  %v490_v22 = vld [vmem:[%s2103_s30 + $0x1d8] sm:$0xff]  ;;  %v1421_v24 = vpack.c.bf16 %v483_v16, %v479_v15  ;;  %v499_v41 = vsub.s32 0, %v498_v40 }
  0x93   : > { %1444 = vmatprep.subr.bf16.mxu1 %v1443_v57  ;;  %v485_v19 = vld [vmem:[%s2103_s30 + $0x1b0] sm:$0xff]  ;;  %v492_v21 = vld [vmem:[%s2103_s30 + $0x1e8] sm:$0xff]  ;;  %v494_v23 = vld [vmem:[%s2103_s30 + $0x1f8] sm:$0xff]  ;;  %v507_v43 = vsub.s32 2, %v498_v40  ;;  %v503_v44 = vsub.s32 1, %v498_v40  ;;  %v511_v45 = vsub.s32 3, %v498_v40 }
  0x94   : > { %v1453_v25 = vpack.c.bf16 %v485_v19, %v481_v17  ;;  %v1423_v26 = vpack.c.bf16 %v492_v21, %v488_v20  ;;  %v487_v27 = vld [vmem:[%s2103_s30 + $0x1c0] sm:$0xff]  ;;  %v1455_v29 = vpack.c.bf16 %v494_v23, %v490_v22  ;;  %v489_v30 = vld [vmem:[%s2103_s30 + $0x1d0] sm:$0xff]  ;;  %v421_v37 = vld [vmem:[#allocation5 + $0x8] sm:$0xff] }
  0x95   : > { %1414 = vmatpush1.bf16.msra.mxu0 %v1413_v63  ;;  %v491_v28 = vld [vmem:[%s2103_s30 + $0x1e0] sm:$0xff]  ;;  %v493_v31 = vld [vmem:[%s2103_s30 + $0x1f0] sm:$0xff] }
  0x96   : > { %1446 = vmatpush1.bf16.msra.mxu1 %v1445_v0  ;;  %1416 = vmatprep.subr.bf16.mxu0 %v1415_v1  ;;  %v1425_v32 = vpack.c.bf16 %v491_v28, %v487_v27  ;;  %v420_v33 = vld [vmem:[#allocation5] sm:$0xff]  ;;  %v1457_v35 = vpack.c.bf16 %v493_v31, %v489_v30 }
  0x97   : > { %1448 = vmatprep.subr.bf16.mxu1 %v1447_v5  ;;  %v1288_v34 = vld [vmem:[%s2373_s4] ss:$0 sm:$0xff] }
  0x98   : > { %v429_v36 = vsub.f32 %v420_v33, %v1288_v34  ;;  %v430_v38 = vsub.f32 %v421_v37, %v1288_v34  ;;  %v495_v42 = vld [vmem:[%s402_s16] sm:$0xf] }
  0x99   : > { %1418 = vmatpush1.bf16.msra.mxu0 %v1417_v12  ;;  %v500_v46 = vrot.slane %v495_v42, %v499_v41  ;;  %v508_v47 = vrot.slane %v495_v42, %v507_v43  ;;  %v504_v48 = vrot.slane %v495_v42, %v503_v44  ;;  %v512_v49 = vrot.slane %v495_v42, %v511_v45 }
  0x9a   : > { %1450 = vmatpush1.bf16.msra.mxu1 %v1449_v13  ;;  %1420 = vmatprep.subr.bf16.mxu0 %v1419_v14 }
  0x9b   : > { %1452 = vmatprep.subr.bf16.mxu1 %v1451_v18 }
  0x9d   : > { %1422 = vmatpush1.bf16.msra.mxu0 %v1421_v24 }
  0x9e   : > { %1454 = vmatpush1.bf16.msra.mxu1 %v1453_v25  ;;  %1424 = vmatprep.subr.bf16.mxu0 %v1423_v26 }
  0x9f   : > { %1456 = vmatprep.subr.bf16.mxu1 %v1455_v29 }
  0xa1   : > { %1426 = vmatpush1.bf16.msra.mxu0 %v1425_v32 }
  0xa2   : > { %1458 = vmatpush1.bf16.msra.mxu1 %v1457_v35 }
  0xa4   : > { %582 = vmatmul.mubr.f32.vlgmr.msra.gmra.mrb[0].mxu0 %v429_v36 }
  0xa5   : > { %659 = vmatmul.mubr.f32.vlgmr.msra.gmra.mrb[0].mxu1 %v429_v36  ;;  %587 = vmatprep.mubr.f32.mxu0 %v1879_v7 }
  0xa6   : > { %664 = vmatprep.mubr.f32.mxu1 %v1879_v7 }
  0xa8   : > { %588 = vmatmul.mubr.f32.gmra.mrb[2].mxu0 %v430_v38 }
  0xa9   : > { %665 = vmatmul.mubr.f32.gmra.mrb[2].mxu1 %v430_v38 }
 0x177   : > { %v583_v50 = vpop.f32.mrb[0].mxu0 }
 0x178   : > { %v584_v7 = vadd.f32 %v583_v50, %v500_v46  ;;  %v660_v51 = vpop.f32.mrb[0].mxu1  ;;  %v585_v52 = vpop.f32.mrb[1].mxu0 }
 0x179   : > { %v661_v53 = vadd.f32 %v660_v51, %v508_v47  ;;  %v586_v54 = vadd.f32 %v585_v52, %v504_v48  ;;  %v662_v55 = vpop.f32.mrb[1].mxu1 }
 0x17a   : > { %674 = vst [vmem:[%s673_s11] sm:$0xff] %v584_v7  ;;  %v663_v56 = vadd.f32 %v662_v55, %v512_v49 }
 0x17b   : > { %676 = vst [vmem:[%s673_s11 + $0x10] sm:$0xff] %v661_v53  ;;  %675 = vst [vmem:[%s673_s11 + $0x8] sm:$0xff] %v586_v54  ;;  %v589_v57 = vpop.f32.mrb[2].mxu0 }
 0x17c   : > { %677 = vst [vmem:[%s673_s11 + $0x18] sm:$0xff] %v663_v56  ;;  %v590_v58 = vadd.f32 %v589_v57, %v500_v46  ;;  %v666_v59 = vpop.f32.mrb[2].mxu1  ;;  %v591_v60 = vpop.f32.mrb[3].mxu0 }
 0x17d   : > { %v667_v61 = vadd.f32 %v666_v59, %v508_v47  ;;  %v592_v62 = vadd.f32 %v591_v60, %v504_v48  ;;  %v668_v63 = vpop.f32.mrb[3].mxu1 }
 0x17e   : > { %678 = vst [vmem:[%s673_s11 + $0x20] sm:$0xff] %v590_v58  ;;  %v669_v0 = vadd.f32 %v668_v63, %v512_v49 }
 0x17f   : > { %680 = vst [vmem:[%s673_s11 + $0x30] sm:$0xff] %v667_v61  ;;  %679 = vst [vmem:[%s673_s11 + $0x28] sm:$0xff] %v592_v62 }
 0x180   : > { %681 = vst [vmem:[%s673_s11 + $0x38] sm:$0xff] %v669_v0 }
 0x181 PF: > { %p1291_p9 = scmp.ne.s32.totalorder %s1862_s25, 1 }
 0x182   : > { %v1880_v63 = vmov (!%p1291_p9), 0.0  }
 0x183   : > { %685 = sbr.rel (%p1291_p9) target bundleno = 991 (0x3df), region = 60  ;;  %785 = vst [vmem:[#allocation4] sm:$0xff] (!%p1291_p9), %v1880_v63  ;;  %786 = vst [vmem:[#allocation4 + $0x8] sm:$0xff] (!%p1291_p9), %v1880_v63 }
 0x187   : > { %v686_v1 = vld [vmem:[#allocation2] sm:$0xff] (!%p1291_p9)  ;;  %v687_v2 = vld [vmem:[#allocation2 + $0x8] sm:$0xff] (!%p1291_p9)  ;;  %v688_v3 = vld [vmem:[#allocation2 + $0x10] sm:$0xff] (!%p1291_p9) }
 0x188   : > { %v689_v4 = vld [vmem:[#allocation2 + $0x18] sm:$0xff] (!%p1291_p9)  ;;  %v694_v5 = vmax.f32 (!%p1291_p9), %v686_v1, %v688_v3  ;;  %v690_v6 = vld [vmem:[#allocation2 + $0x20] sm:$0xff] (!%p1291_p9)  ;;  %v691_v8 = vld [vmem:[#allocation2 + $0x28] sm:$0xff] (!%p1291_p9) }
 0x189   : > { %v695_v9 = vmax.f32 (!%p1291_p9), %v687_v2, %v689_v4  ;;  %v692_v10 = vld [vmem:[#allocation2 + $0x30] sm:$0xff] (!%p1291_p9)  ;;  %v693_v11 = vld [vmem:[#allocation2 + $0x38] sm:$0xff] (!%p1291_p9) }
 0x18a   : > { %v699_v12 = vmax.f32 %v690_v6, %v692_v10  ;;  %v700_v13 = vmax.f32 %v691_v8, %v693_v11 }
 0x18b   : > { %v696_v14 = vmax.f32 %v694_v5, %v695_v9 }
 0x18c   : > { %v701_v15 = vmax.f32 %v699_v12, %v700_v13 }
 0x18d   : > { %697 = vmax.xlane.f32.xlu0 %v696_v14 }
 0x191   : > { %702 = vmax.xlane.f32.xlu0 %v701_v15 }
 0x21a   : > { %v698_v16 = vpop.xlane.xlu0 %697 }
 0x21b   : > { %vm704_vm0 = vcmp.ge.f32.partialorder %v686_v1, %v698_v16  ;;  %vm705_vm1 = vcmp.ge.f32.partialorder %v687_v2, %v698_v16  ;;  %vm706_vm2 = vcmp.ge.f32.partialorder %v688_v3, %v698_v16  ;;  %vm707_vm3 = vcmp.ge.f32.partialorder %v689_v4, %v698_v16 }
 0x21c   : > { %v712_v17 = vsel %vm704_vm0, -inf, %v686_v1  ;;  %v713_v18 = vsel %vm705_vm1, -inf, %v687_v2  ;;  %v714_v19 = vsel %vm706_vm2, -inf, %v688_v3  ;;  %v715_v20 = vsel %vm707_vm3, -inf, %v689_v4 }
 0x21d   : > { %v720_v21 = vmax.f32 %v712_v17, %v714_v19  ;;  %v721_v22 = vmax.f32 %v713_v18, %v715_v20 }
 0x21e   : > { %v703_v23 = vpop.xlane.xlu0 %702 }
 0x21f   : > { %vm708_vm4 = vcmp.ge.f32.partialorder %v690_v6, %v703_v23  ;;  %vm709_vm5 = vcmp.ge.f32.partialorder %v691_v8, %v703_v23  ;;  %vm710_vm6 = vcmp.ge.f32.partialorder %v692_v10, %v703_v23  ;;  %vm711_vm7 = vcmp.ge.f32.partialorder %v693_v11, %v703_v23 }
 0x220   : > { %v722_v24 = vmax.f32 %v720_v21, %v721_v22  ;;  %v716_v25 = vsel %vm708_vm4, -inf, %v690_v6  ;;  %v717_v26 = vsel %vm709_vm5, -inf, %v691_v8  ;;  %v718_v27 = vsel %vm710_vm6, -inf, %v692_v10 }
 0x221   : > { %v719_v28 = vsel %vm711_vm7, -inf, %v693_v11  ;;  %v725_v29 = vmax.f32 %v716_v25, %v718_v27 }
 0x222   : > { %723 = vmax.xlane.f32.xlu1 %v722_v24  ;;  %v726_v30 = vmax.f32 %v717_v26, %v719_v28 }
 0x224   : > { %v727_v31 = vmax.f32 %v725_v29, %v726_v30 }
 0x226   : > { %728 = vmax.xlane.f32.xlu1 %v727_v31 }
 0x2af   : > { %v724_v32 = vpop.xlane.xlu1 %723 }
 0x2b0   : > { %vm730_vm8 = vcmp.ge.f32.partialorder %v712_v17, %v724_v32  ;;  %vm731_vm9 = vcmp.ge.f32.partialorder %v713_v18, %v724_v32  ;;  %vm732_vm10 = vcmp.ge.f32.partialorder %v714_v19, %v724_v32  ;;  %vm733_vm11 = vcmp.ge.f32.partialorder %v715_v20, %v724_v32 }
 0x2b1   : > { %v738_v33 = vsel %vm730_vm8, -inf, %v712_v17  ;;  %v739_v34 = vsel %vm731_vm9, -inf, %v713_v18  ;;  %v740_v35 = vsel %vm732_vm10, -inf, %v714_v19  ;;  %v741_v36 = vsel %vm733_vm11, -inf, %v715_v20 }
 0x2b2   : > { %v746_v37 = vmax.f32 %v738_v33, %v740_v35  ;;  %v747_v38 = vmax.f32 %v739_v34, %v741_v36  ;;  %vm782_vm8 = vcmask 7168  }
 0x2b3   : > { %v729_v39 = vpop.xlane.xlu1 %728 }
 0x2b4   : > { %vm734_vm12 = vcmp.ge.f32.partialorder %v716_v25, %v729_v39  ;;  %vm735_vm13 = vcmp.ge.f32.partialorder %v717_v26, %v729_v39  ;;  %vm736_vm14 = vcmp.ge.f32.partialorder %v718_v27, %v729_v39  ;;  %vm737_vm15 = vcmp.ge.f32.partialorder %v719_v28, %v729_v39 }
 0x2b5   : > { %v748_v40 = vmax.f32 %v746_v37, %v747_v38  ;;  %v742_v41 = vsel %vm734_vm12, -inf, %v716_v25  ;;  %v743_v42 = vsel %vm735_vm13, -inf, %v717_v26  ;;  %v744_v43 = vsel %vm736_vm14, -inf, %v718_v27 }
 0x2b6   : > { %v745_v44 = vsel %vm737_vm15, -inf, %v719_v28  ;;  %v751_v45 = vmax.f32 %v742_v41, %v744_v43 }
 0x2b7   : > { %749 = vmax.xlane.f32.xlu0 %v748_v40  ;;  %v752_v46 = vmax.f32 %v743_v42, %v745_v44 }
 0x2b9   : > { %v753_v47 = vmax.f32 %v751_v45, %v752_v46 }
 0x2bb   : > { %754 = vmax.xlane.f32.xlu1 %v753_v47 }
 0x344   : > { %v750_v48 = vpop.xlane.xlu0 %749 }
 0x345   : > { %vm756_vm0 = vcmp.ge.f32.partialorder %v738_v33, %v750_v48  ;;  %vm757_vm1 = vcmp.ge.f32.partialorder %v739_v34, %v750_v48  ;;  %vm758_vm2 = vcmp.ge.f32.partialorder %v740_v35, %v750_v48  ;;  %vm759_vm3 = vcmp.ge.f32.partialorder %v741_v36, %v750_v48 }
 0x346   : > { %v764_v49 = vsel %vm756_vm0, -inf, %v738_v33  ;;  %v765_v50 = vsel %vm757_vm1, -inf, %v739_v34  ;;  %v766_v7 = vsel %vm758_vm2, -inf, %v740_v35  ;;  %v767_v51 = vsel %vm759_vm3, -inf, %v741_v36 }
 0x347   : > { %v772_v52 = vmax.f32 %v764_v49, %v766_v7  ;;  %v773_v53 = vmax.f32 %v765_v50, %v767_v51 }
 0x348   : > { %v755_v54 = vpop.xlane.xlu1 %754 }
 0x349   : > { %v774_v55 = vmax.f32 %v772_v52, %v773_v53  ;;  %vm760_vm4 = vcmp.ge.f32.partialorder %v742_v41, %v755_v54  ;;  %vm761_vm5 = vcmp.ge.f32.partialorder %v743_v42, %v755_v54  ;;  %vm762_vm6 = vcmp.ge.f32.partialorder %v744_v43, %v755_v54 }
 0x34a   : > { %vm763_vm7 = vcmp.ge.f32.partialorder %v745_v44, %v755_v54  ;;  %v768_v56 = vsel %vm760_vm4, -inf, %v742_v41  ;;  %v769_v57 = vsel %vm761_vm5, -inf, %v743_v42  ;;  %v770_v58 = vsel %vm762_vm6, -inf, %v744_v43 }
 0x34b   : > { %775 = vmax.xlane.f32.xlu0 %v774_v55  ;;  %v771_v59 = vsel %vm763_vm7, -inf, %v745_v44  ;;  %v777_v60 = vmax.f32 %v768_v56, %v770_v58 }
 0x34c   : > { %v778_v61 = vmax.f32 %v769_v57, %v771_v59 }
 0x34e   : > { %v779_v62 = vmax.f32 %v777_v60, %v778_v61 }
 0x350   : > { %780 = vmax.xlane.f32.xlu1 %v779_v62 }
 0x3d8   : > { %v776_v0 = vpop.xlane.xlu0 %775 }
 0x3d9   : > { %783 = vst.msk [vmem:[#allocation3] sm:$0xff] %vm782_vm8, %v776_v0 }
 0x3dd   : > { %v781_v1 = vpop.xlane.xlu1 %780 }
 0x3de   : > { %784 = vst.msk [vmem:[#allocation3 + $0x8] sm:$0xff] %vm782_vm8, %v781_v1 }
 0x3df PF: > { %p1292_p6 = scmp.lt.s32.totalorder %s1862_s25, 1 }
 0x3e0   : > { %v803_v2 = vld [vmem:[#allocation3] sm:$0xff] (!%p1292_p6)  ;;  %v865_v3 = vld [vmem:[%s2113_s29 + $0x80] sm:$0xff] (!%p1292_p6)  ;;  %v1881_v4 = vmov (!%p1292_p6), 0   ;;  %v866_v6 = vld [vmem:[%s2113_s29 + $0x88] sm:$0xff] (!%p1292_p6)  ;;  %s1293_s8 = sadd.s32 (!%p1292_p6), 4294967295, %s1862_s25 }
 0x3e1   : > { %790 = sbr.rel (%p1292_p6) target bundleno = 1348 (0x544), region = 64  ;;  %1643 = vset.pattern.permute.xlu0 (!%p1292_p6), %v1881_v4  ;;  %v897_v8 = vld [vmem:[%s2113_s29 + $0x180] sm:$0xff] (!%p1292_p6)  ;;  %v898_v9 = vld [vmem:[%s2113_s29 + $0x188] sm:$0xff] (!%p1292_p6)  ;;  %v1459_v10 = vpack.c.bf16 (!%p1292_p6), %v866_v6, %v865_v3  ;;  %v867_v17 = vld [vmem:[%s2113_s29 + $0x90] sm:$0xff] (!%p1292_p6)  ;;  %s1317_s17 = sshll.u32 (!%p1292_p6), %s1293_s8, 6 }
 0x3e2   : > { %807 = vperm.xlu0 (!%p1292_p6), %1643, %v803_v2   ;;  %v1491_v11 = vpack.c.bf16 (!%p1292_p6), %v898_v9, %v897_v8  ;;  %v849_v12 = vld [vmem:[%s2113_s29] sm:$0xff] (!%p1292_p6)  ;;  %v850_v13 = vld [vmem:[%s2113_s29 + $0x8] sm:$0xff] (!%p1292_p6)  ;;  %v868_v18 = vld [vmem:[%s2113_s29 + $0x98] sm:$0xff] (!%p1292_p6)  ;;  %s794_s13 = scalar_lea.vmem (!%p1292_p6), [#allocation2], %s1317_s17 }
 0x3e3   : > { %v881_v14 = vld [vmem:[%s2113_s29 + $0x100] sm:$0xff] (!%p1292_p6)  ;;  %v1461_v15 = vpack.c.bf16 (!%p1292_p6), %v850_v13, %v849_v12  ;;  %v882_v16 = vld [vmem:[%s2113_s29 + $0x108] sm:$0xff] (!%p1292_p6)  ;;  %1460 = vmatprep.subr.bf16.mxu0 (!%p1292_p6), %v1459_v10  ;;  %v1463_v20 = vpack.c.bf16 (!%p1292_p6), %v868_v18, %v867_v17  ;;  %v899_v21 = vld [vmem:[%s2113_s29 + $0x190] sm:$0xff] (!%p1292_p6) }
 0x3e4   : > { %1492 = vmatprep.subr.bf16.mxu1 (!%p1292_p6), %v1491_v11  ;;  %v1493_v19 = vpack.c.bf16 (!%p1292_p6), %v882_v16, %v881_v14  ;;  %v900_v22 = vld [vmem:[%s2113_s29 + $0x198] sm:$0xff] (!%p1292_p6)  ;;  %v851_v23 = vld [vmem:[%s2113_s29 + $0x10] sm:$0xff] (!%p1292_p6)  ;;  %v869_v30 = vld [vmem:[%s2113_s29 + $0xa0] sm:$0xff] (!%p1292_p6) }
 0x3e5   : > { %v804_v5 = vld [vmem:[#allocation3 + $0x8] sm:$0xff] (!%p1292_p6)  ;;  %1462 = vmatpush3.bf16.msra.mxu0 (!%p1292_p6), %v1461_v15  ;;  %v1495_v24 = vpack.c.bf16 (!%p1292_p6), %v900_v22, %v899_v21  ;;  %v883_v26 = vld [vmem:[%s2113_s29 + $0x110] sm:$0xff] (!%p1292_p6)  ;;  %v870_v31 = vld [vmem:[%s2113_s29 + $0xa8] sm:$0xff] (!%p1292_p6) }
 0x3e6   : > { %v852_v25 = vld [vmem:[%s2113_s29 + $0x18] sm:$0xff] (!%p1292_p6)  ;;  %812 = vperm.xlu0 (!%p1292_p6), %1643, %v804_v5   ;;  %1494 = vmatpush3.bf16.msra.mxu1 (!%p1292_p6), %v1493_v19  ;;  %v901_v32 = vld [vmem:[%s2113_s29 + $0x1a0] sm:$0xff] (!%p1292_p6)  ;;  %v1467_v33 = vpack.c.bf16 (!%p1292_p6), %v870_v31, %v869_v30  ;;  %v902_v34 = vld [vmem:[%s2113_s29 + $0x1a8] sm:$0xff] (!%p1292_p6) }
 0x3e7   : > { %v884_v27 = vld [vmem:[%s2113_s29 + $0x118] sm:$0xff] (!%p1292_p6)  ;;  %v1465_v28 = vpack.c.bf16 (!%p1292_p6), %v852_v25, %v851_v23  ;;  %1464 = vmatprep.subr.bf16.mxu0 (!%p1292_p6), %v1463_v20  ;;  %1496 = vmatprep.subr.bf16.mxu1 (!%p1292_p6), %v1495_v24  ;;  %v853_v35 = vld [vmem:[%s2113_s29 + $0x20] sm:$0xff] (!%p1292_p6)  ;;  %v854_v36 = vld [vmem:[%s2113_s29 + $0x28] sm:$0xff] (!%p1292_p6)  ;;  %v1499_v37 = vpack.c.bf16 (!%p1292_p6), %v902_v34, %v901_v32 }
 0x3e8   : > { %v1497_v29 = vpack.c.bf16 %v884_v27, %v883_v26  ;;  %v885_v38 = vld [vmem:[%s2113_s29 + $0x120] sm:$0xff]  ;;  %v886_v39 = vld [vmem:[%s2113_s29 + $0x128] sm:$0xff]  ;;  %v871_v40 = vld [vmem:[%s2113_s29 + $0xb0] sm:$0xff]  ;;  %v1469_v41 = vpack.c.bf16 %v854_v36, %v853_v35 }
 0x3e9   : > { %1466 = vmatpush3.bf16.msra.mxu0 %v1465_v28  ;;  %v872_v42 = vld [vmem:[%s2113_s29 + $0xb8] sm:$0xff]  ;;  %v903_v43 = vld [vmem:[%s2113_s29 + $0x1b0] sm:$0xff]  ;;  %v1501_v45 = vpack.c.bf16 %v886_v39, %v885_v38  ;;  %v873_v51 = vld [vmem:[%s2113_s29 + $0xc0] sm:$0xff] }
 0x3ea   : > { %v904_v44 = vld [vmem:[%s2113_s29 + $0x1b8] sm:$0xff]  ;;  %1498 = vmatpush3.bf16.msra.mxu1 %v1497_v29  ;;  %1468 = vmatprep.subr.bf16.mxu0 %v1467_v33  ;;  %v1471_v46 = vpack.c.bf16 %v872_v42, %v871_v40  ;;  %v855_v47 = vld [vmem:[%s2113_s29 + $0x30] sm:$0xff]  ;;  %v874_v52 = vld [vmem:[%s2113_s29 + $0xc8] sm:$0xff] }
 0x3eb   : > { %v856_v48 = vld [vmem:[%s2113_s29 + $0x38] sm:$0xff]  ;;  %v887_v49 = vld [vmem:[%s2113_s29 + $0x130] sm:$0xff]  ;;  %1500 = vmatprep.subr.bf16.mxu1 %v1499_v37  ;;  %v1503_v50 = vpack.c.bf16 %v904_v44, %v903_v43  ;;  %v905_v53 = vld [vmem:[%s2113_s29 + $0x1c0] sm:$0xff]  ;;  %v1475_v57 = vpack.c.bf16 %v874_v52, %v873_v51 }
 0x3ec   : > { %v888_v7 = vld [vmem:[%s2113_s29 + $0x138] sm:$0xff]  ;;  %v906_v54 = vld [vmem:[%s2113_s29 + $0x1c8] sm:$0xff]  ;;  %v1473_v55 = vpack.c.bf16 %v856_v48, %v855_v47  ;;  %v857_v58 = vld [vmem:[%s2113_s29 + $0x40] sm:$0xff] }
 0x3ed   : > { %1470 = vmatpush3.bf16.msra.mxu0 %v1469_v41  ;;  %v1505_v56 = vpack.c.bf16 %v888_v7, %v887_v49  ;;  %v858_v59 = vld [vmem:[%s2113_s29 + $0x48] sm:$0xff]  ;;  %v889_v60 = vld [vmem:[%s2113_s29 + $0x140] sm:$0xff]  ;;  %v1507_v61 = vpack.c.bf16 %v906_v54, %v905_v53  ;;  %v875_v63 = vld [vmem:[%s2113_s29 + $0xd0] sm:$0xff] }
 0x3ee   : > { %1502 = vmatpush3.bf16.msra.mxu1 %v1501_v45  ;;  %1472 = vmatprep.subr.bf16.mxu0 %v1471_v46  ;;  %v890_v62 = vld [vmem:[%s2113_s29 + $0x148] sm:$0xff]  ;;  %v876_v0 = vld [vmem:[%s2113_s29 + $0xd8] sm:$0xff]  ;;  %v907_v1 = vld [vmem:[%s2113_s29 + $0x1d0] sm:$0xff]  ;;  %v1477_v3 = vpack.c.bf16 %v858_v59, %v857_v58 }
 0x3ef   : > { %1504 = vmatprep.subr.bf16.mxu1 %v1503_v50  ;;  %v908_v2 = vld [vmem:[%s2113_s29 + $0x1d8] sm:$0xff]  ;;  %v1509_v4 = vpack.c.bf16 %v890_v62, %v889_v60  ;;  %v1479_v5 = vpack.c.bf16 %v876_v0, %v875_v63  ;;  %v859_v6 = vld [vmem:[%s2113_s29 + $0x50] sm:$0xff]  ;;  %v877_v12 = vld [vmem:[%s2113_s29 + $0xe0] sm:$0xff] }
 0x3f0   : > { %v860_v8 = vld [vmem:[%s2113_s29 + $0x58] sm:$0xff]  ;;  %v891_v9 = vld [vmem:[%s2113_s29 + $0x150] sm:$0xff]  ;;  %v1511_v10 = vpack.c.bf16 %v908_v2, %v907_v1  ;;  %v878_v13 = vld [vmem:[%s2113_s29 + $0xe8] sm:$0xff] }
 0x3f1   : > { %1474 = vmatpush3.bf16.msra.mxu0 %v1473_v55  ;;  %v892_v11 = vld [vmem:[%s2113_s29 + $0x158] sm:$0xff]  ;;  %v909_v14 = vld [vmem:[%s2113_s29 + $0x1e0] sm:$0xff]  ;;  %v910_v15 = vld [vmem:[%s2113_s29 + $0x1e8] sm:$0xff]  ;;  %v1481_v16 = vpack.c.bf16 %v860_v8, %v859_v6  ;;  %v1483_v18 = vpack.c.bf16 %v878_v13, %v877_v12 }
 0x3f2   : > { %1506 = vmatpush3.bf16.msra.mxu1 %v1505_v56  ;;  %1476 = vmatprep.subr.bf16.mxu0 %v1475_v57  ;;  %v1513_v17 = vpack.c.bf16 %v892_v11, %v891_v9  ;;  %v861_v19 = vld [vmem:[%s2113_s29 + $0x60] sm:$0xff]  ;;  %v862_v20 = vld [vmem:[%s2113_s29 + $0x68] sm:$0xff]  ;;  %v1515_v22 = vpack.c.bf16 %v910_v15, %v909_v14  ;;  %v879_v24 = vld [vmem:[%s2113_s29 + $0xf0] sm:$0xff] }
 0x3f3   : > { %1508 = vmatprep.subr.bf16.mxu1 %v1507_v61  ;;  %v893_v21 = vld [vmem:[%s2113_s29 + $0x160] sm:$0xff]  ;;  %v894_v23 = vld [vmem:[%s2113_s29 + $0x168] sm:$0xff]  ;;  %v880_v25 = vld [vmem:[%s2113_s29 + $0xf8] sm:$0xff]  ;;  %v1485_v28 = vpack.c.bf16 %v862_v20, %v861_v19 }
 0x3f4   : > { %v911_v26 = vld [vmem:[%s2113_s29 + $0x1f0] sm:$0xff]  ;;  %v912_v27 = vld [vmem:[%s2113_s29 + $0x1f8] sm:$0xff]  ;;  %v1517_v29 = vpack.c.bf16 %v894_v23, %v893_v21  ;;  %v1487_v30 = vpack.c.bf16 %v880_v25, %v879_v24  ;;  %v798_v39 = vld [vmem:[%s794_s13 + $0x18] sm:$0xff] }
 0x3f5   : > { %1478 = vmatpush3.bf16.msra.mxu0 %v1477_v3  ;;  %v863_v31 = vld [vmem:[%s2113_s29 + $0x70] sm:$0xff]  ;;  %v864_v32 = vld [vmem:[%s2113_s29 + $0x78] sm:$0xff]  ;;  %v1519_v33 = vpack.c.bf16 %v912_v27, %v911_v26  ;;  %v797_v41 = vld [vmem:[%s794_s13 + $0x10] sm:$0xff]  ;;  %v826_v47 = vmax.f32 %v798_v39, 0.0 }
 0x3f6   : > { %1510 = vmatpush3.bf16.msra.mxu1 %v1509_v4  ;;  %1480 = vmatprep.subr.bf16.mxu0 %v1479_v5  ;;  %v895_v34 = vld [vmem:[%s2113_s29 + $0x170] sm:$0xff]  ;;  %v896_v35 = vld [vmem:[%s2113_s29 + $0x178] sm:$0xff]  ;;  %v1489_v36 = vpack.c.bf16 %v864_v32, %v863_v31  ;;  %v802_v43 = vld [vmem:[%s794_s13 + $0x38] sm:$0xff]  ;;  %v825_v49 = vmax.f32 %v797_v41, 0.0 }
 0x3f7   : > { %1512 = vmatprep.subr.bf16.mxu1 %v1511_v10  ;;  %v1521_v37 = vpack.c.bf16 %v896_v35, %v895_v34  ;;  %v796_v38 = vld [vmem:[%s794_s13 + $0x8] sm:$0xff]  ;;  %v795_v40 = vld [vmem:[%s794_s13] sm:$0xff]  ;;  %v801_v45 = vld [vmem:[%s794_s13 + $0x30] sm:$0xff]  ;;  %v830_v51 = vmax.f32 %v802_v43, 0.0 }
 0x3f8   : > { %v800_v42 = vld [vmem:[%s794_s13 + $0x28] sm:$0xff]  ;;  %v799_v44 = vld [vmem:[%s794_s13 + $0x20] sm:$0xff]  ;;  %v824_v46 = vmax.f32 %v796_v38, 0.0  ;;  %v823_v48 = vmax.f32 %v795_v40, 0.0  ;;  %v829_v53 = vmax.f32 %v801_v45, 0.0  ;;  %v847_v5 = vld [vmem:[#allocation4] sm:$0xff] }
 0x3f9   : > { %1482 = vmatpush3.bf16.msra.mxu0 %v1481_v16  ;;  %v828_v7 = vmax.f32 %v800_v42, 0.0  ;;  %v827_v52 = vmax.f32 %v799_v44, 0.0  ;;  %v848_v15 = vld [vmem:[#allocation4 + $0x8] sm:$0xff] }
 0x3fa   : > { %1514 = vmatpush3.bf16.msra.mxu1 %v1513_v17  ;;  %1484 = vmatprep.subr.bf16.mxu0 %v1483_v18 }
 0x3fb   : > { %1516 = vmatprep.subr.bf16.mxu1 %v1515_v22 }
 0x3fd   : > { %1486 = vmatpush3.bf16.msra.mxu0 %v1485_v28 }
 0x3fe   : > { %1518 = vmatpush3.bf16.msra.mxu1 %v1517_v29  ;;  %1488 = vmatprep.subr.bf16.mxu0 %v1487_v30 }
 0x3ff   : > { %1520 = vmatprep.subr.bf16.mxu1 %v1519_v33 }
 0x401   : > { %1490 = vmatpush3.bf16.msra.mxu0 %v1489_v36 }
 0x402   : > { %1522 = vmatpush3.bf16.msra.mxu1 %v1521_v37 }
 0x461   : > { %v808_v50 = vpop.permute.xlu0 %807 }
 0x462   : > { %vm816_vm9 = vcmp.ge.f32.partialorder %v796_v38, %v808_v50  ;;  %vm818_vm10 = vcmp.ge.f32.partialorder %v798_v39, %v808_v50  ;;  %vm815_vm11 = vcmp.ge.f32.partialorder %v795_v40, %v808_v50  ;;  %vm817_vm12 = vcmp.ge.f32.partialorder %v797_v41, %v808_v50 }
 0x463   : > { %v832_v54 = vsel %vm816_vm9, %v824_v46, 0.0  ;;  %1296 = vmatprep.mubr.msk.f32.mxu0 %vm816_vm9, %v824_v46  ;;  %v834_v55 = vsel %vm818_vm10, %v826_v47, 0.0  ;;  %1300 = vmatprep.mubr.msk.f32.mxu1 %vm818_vm10, %v826_v47  ;;  %v831_v56 = vsel %vm815_vm11, %v823_v48, 0.0  ;;  %v833_v57 = vsel %vm817_vm12, %v825_v49, 0.0 }
 0x464   : > { %840 = vst [vmem:[%s2128_s15 + $0x8] sm:$0xff] %v832_v54  ;;  %842 = vst [vmem:[%s2128_s15 + $0x18] sm:$0xff] %v834_v55  ;;  %1297 = vmatmul.mubr.msk.f32.vlgmr.msra.gmra.mrb[0].mxu0 %vm815_vm11, %v823_v48  ;;  %1301 = vmatmul.mubr.msk.f32.vlgmr.msra.gmra.mrb[0].mxu1 %vm817_vm12, %v825_v49 }
 0x465   : > { %839 = vst [vmem:[%s2128_s15] sm:$0xff] %v831_v56  ;;  %841 = vst [vmem:[%s2128_s15 + $0x10] sm:$0xff] %v833_v57  ;;  %v813_v58 = vpop.permute.xlu0 %812 }
 0x466   : > { %vm820_vm13 = vcmp.ge.f32.partialorder %v800_v42, %v813_v58  ;;  %vm822_vm14 = vcmp.ge.f32.partialorder %v802_v43, %v813_v58  ;;  %vm819_vm15 = vcmp.ge.f32.partialorder %v799_v44, %v813_v58  ;;  %vm821_vm0 = vcmp.ge.f32.partialorder %v801_v45, %v813_v58 }
 0x467   : > { %v836_v59 = vsel %vm820_vm13, %v828_v7, 0.0  ;;  %1298 = vmatprep.mubr.msk.f32.mxu0 %vm820_vm13, %v828_v7  ;;  %v838_v60 = vsel %vm822_vm14, %v830_v51, 0.0  ;;  %1302 = vmatprep.mubr.msk.f32.mxu1 %vm822_vm14, %v830_v51  ;;  %v835_v61 = vsel %vm819_vm15, %v827_v52, 0.0  ;;  %v837_v62 = vsel %vm821_vm0, %v829_v53, 0.0 }
 0x468   : > { %844 = vst [vmem:[%s2128_s15 + $0x28] sm:$0xff] %v836_v59  ;;  %846 = vst [vmem:[%s2128_s15 + $0x38] sm:$0xff] %v838_v60  ;;  %1299 = vmatmul.mubr.msk.f32.gmra.mrb[2].mxu0 %vm819_vm15, %v827_v52  ;;  %1303 = vmatmul.mubr.msk.f32.gmra.mrb[2].mxu1 %vm821_vm0, %v829_v53 }
 0x469   : > { %843 = vst [vmem:[%s2128_s15 + $0x20] sm:$0xff] %v835_v61  ;;  %845 = vst [vmem:[%s2128_s15 + $0x30] sm:$0xff] %v837_v62 }
 0x537   : > { %v1351_v63 = vpop.f32.mrb[0].mxu0  ;;  %v1389_v0 = vpop.f32.mrb[0].mxu1 }
 0x538   : > { %v1352_v1 = vpop.f32.mrb[1].mxu0  ;;  %v1390_v2 = vpop.f32.mrb[1].mxu1 }
 0x539   : > { %v1353_v3 = vadd.f32 %v1352_v1, %v1351_v63  ;;  %v1391_v4 = vadd.f32 %v1390_v2, %v1389_v0 }
 0x53b   : > { %v1055_v6 = vadd.f32 %v1391_v4, %v1353_v3  ;;  %v1354_v8 = vpop.f32.mrb[2].mxu0  ;;  %v1392_v9 = vpop.f32.mrb[2].mxu1 }
 0x53c   : > { %v1355_v10 = vpop.f32.mrb[3].mxu0  ;;  %v1393_v11 = vpop.f32.mrb[3].mxu1 }
 0x53d   : > { %v1063_v12 = vadd.f32 %v1055_v6, %v847_v5  ;;  %v1356_v13 = vadd.f32 %v1355_v10, %v1354_v8  ;;  %v1394_v14 = vadd.f32 %v1393_v11, %v1392_v9 }
 0x53f   : > { %1065 = vst [vmem:[#allocation4] sm:$0xff] %v1063_v12  ;;  %v1060_v16 = vadd.f32 %v1394_v14, %v1356_v13 }
 0x541   : > { %v1064_v17 = vadd.f32 %v1060_v16, %v848_v15 }
 0x543   : > { %1066 = vst [vmem:[#allocation4 + $0x8] sm:$0xff] %v1064_v17 }
 0x544 PF: > { %1069 = sbr.rel (%p1291_p9) target bundleno = 1358 (0x54e), region = 68  ;;  %v1305_v19 = vld [vmem:[%s2373_s4] ss:$0 sm:$0xff] (!%p1291_p9) }
 0x546   : > { %v1070_v18 = vld [vmem:[#allocation4] sm:$0xff] (!%p1291_p9) }
 0x547   : > { %v1079_v21 = vadd.f32 (!%p1291_p9), %v1305_v19, %v1070_v18 }
 0x549   : > { %1081 = vst [vmem:[#allocation11] sm:$0xff] (!%p1291_p9), %v1079_v21 }
 0x54a   : > { %v1071_v20 = vld [vmem:[#allocation4 + $0x8] sm:$0xff] (!%p1291_p9) }
 0x54b   : > { %v1080_v22 = vadd.f32 %v1305_v19, %v1071_v20 }
 0x54d   : > { %1082 = vst [vmem:[#allocation11 + $0x8] sm:$0xff] %v1080_v22 }
 0x54e PF: > { %s1882_s16 = smov [#allocation11]   ;;  %p2407_p12 = scmp.eq.s32.totalorder %s2002_s10, 1 }
 0x54f   : > { %s1097_s7 = sshll.u32 %s1882_s16, 4  ;;  %s1098_s7 = int_to_ptr.vmem [resolvable:$true] %s1097_s7 }
 0x550   : > { %s1732_s18 = scalar_lea.vmem %s1098_s7, 256  ;;  %p1739_p10 = scmp.lt.s32.totalorder %s1098_s7, %s1098_s7 }
 0x551   : > { %p1733_p8 = scmp.ne.s32.totalorder %s1098_s7, %s1732_s18  ;;  %p1740_p2 = scmp.lt.s32.totalorder %s1732_s18, %s1732_s18 }
 0x553   : > { %p1734_p7 = pnand %p1733_p8, %p2407_p12  ;;  %p1741_p11 = por %p1740_p2, %p1739_p10 }
 0x555   : > { %p1735_p5 = pneg %p1734_p7 }
 0x557   : > { %p1742_p1 = pnand %p1741_p11, %p1735_p5 }
 0x559   : > { %1745 = shalt.err (!%p1742_p1)
}
 0x55a   : > { %s1746_s23 = scalar_lea.hbm %s2374_s5, 256  ;;  %p2408_p0 = pmov %p2407_p12 }
 0x55b   : > { %p1747_p13 = scmp.ne.s32.totalorder %s2374_s5, %s1746_s23  ;;  %p1752_p9 = scmp.lt.u32.totalorder %s1746_s23, %s2374_s5 }
 0x55d   : > { %p1748_p4 = pnand %p1747_p13, %p2408_p0 }
 0x55f   : > { %p1749_p3 = pneg %p1748_p4 }
 0x561   : > { %p1754_p6 = pnand %p1752_p9, %p1749_p3 }
 0x563   : > { %1757 = shalt.err (!%p1754_p6)
}
 0x564   : > { %s1883_s29 = smov 128   ;;  %s1884_s14 = smov 8  }
 0x565   : > { %p2409_p8 = pmov %p2408_p0  ;;  %s1308_s20 = sadd.s32 4294967295, %s1862_s25 }
 0x566   : > { %p1108_p12 = scmp.gt.s32.totalorder %s1308_s20, 0  ;;  %s1119_s30 = sshll.u32 %s2128_s15, 4  ;;  %s2310_s30 = int_to_ptr.vmem [resolvable:$true] %s1119_s30 }
 0x567   : > { %1532 = dma.vmem_to_hbm [thread:$0]  (%p2409_p8), %s1098_s7, 256, %s2374_s5, [#allocation7], %s1883_s29, %s1883_s29, %s1884_s14  }
 0x568   : > { %s2424_s20 = smov (!%p1108_p12, %s1308_s20), 0  ;;  %s1084_s13 = scalar_lea.sflag [#allocation13], %s2110_s9 }
 0x569   : > { %s1318_s23 = sshll.u32 %s2424_s20, 9  ;;  %s1758_s0 = scalar_lea.vmem %s2310_s30, 1024 }
 0x56a   : > { %s2315_s17 = scalar_lea.hbm %s2375_s6, %s1318_s23  ;;  %p1759_p7 = scmp.ne.s32.totalorder %s2310_s30, %s1758_s0 }
 0x56b   : > { %p2410_p5 = scmp.ne.s32.totalorder %s2396_s19, 0  ;;  %s1885_s25 = smov [#allocation12]  }
 0x56c   : > { %s1762_s15 = sshll.u32 %s1885_s25, 4  ;;  %s1763_s15 = int_to_ptr.vmem [resolvable:$false] %s1762_s15 }
 0x56d   : > { %p1760_p10 = pnand %p1759_p7, %p2410_p5  ;;  %s1764_s7 = scalar_lea.vmem %s1763_s15, 2048 }
 0x56e   : > { %p1765_p11 = scmp.lt.s32.totalorder %s2310_s30, %s1763_s15  ;;  %p1766_p1 = scmp.lt.s32.totalorder %s1764_s7, %s1758_s0 }
 0x56f   : > { %p1761_p2 = pneg %p1760_p10 }
 0x570   : > { %p1767_p13 = por %p1766_p1, %p1765_p11 }
 0x572   : > { %p1768_p0 = pnand %p1767_p13, %p1761_p2 }
 0x574   : > { %1771 = shalt.err (!%p1768_p0)
}
 0x575   : > { %s1772_s29 = scalar_lea.hbm %s2315_s17, 1024  ;;  %s1776_s18 = scalar_lea.hbm %s2375_s6, 1024 }
 0x576   : > { %p1773_p4 = scmp.ne.s32.totalorder %s2315_s17, %s1772_s29  ;;  %p1777_p6 = scmp.lt.u32.totalorder %s2315_s17, %s2375_s6 }
 0x577   : > { %p1778_p8 = scmp.lt.u32.totalorder %s1776_s18, %s1772_s29  ;;  %p1780_p7 = scmp.lt.u32.totalorder %s1772_s29, %s2315_s17 }
 0x578   : > { %p1774_p3 = pnand %p1773_p4, %p2410_p5 }
 0x579   : > { %p1779_p12 = por %p1778_p8, %p1777_p6 }
 0x57a   : > { %p1775_p9 = pneg %p1774_p3 }
 0x57b   : > { %p1781_p10 = por %p1780_p7, %p1779_p12 }
 0x57d   : > { %p1782_p2 = pnand %p1781_p10, %p1775_p9 }
 0x57f   : > { %1785 = shalt.err (!%p1782_p2)
}
 0x580   : > { %s1886_s0 = smov 512   ;;  %s1887_s11 = smov 32  }
 0x581   : > { %1533 = dma.vmem_to_hbm [thread:$0]  (%p2410_p5), %s2310_s30, 1024, %s2315_s17, %s1084_s13, %s1886_s0, %s1886_s0, %s1887_s11  }
 0x582   : > { %p2411_p11 = scmp.eq.s32.totalorder %s2002_s10, 1 }
 0x584   : > { %1835 = dma.done.wait (%p2411_p11), [#allocation7], 256   ;;  %p2412_p1 = pmov %p2411_p11 }
 0x586   : > { %1837 = vsyncadd (%p2412_p1), [#allocation7], 4294967040 }
 0x587 PF: > { %s1138_s8 = sand.u32 1, %s1846_s21   ;;  %p2413_p13 = scmp.ne.s32.totalorder %s2390_s12, 0 }
 0x588   : > { %p2414_p0 = scmp.ge.s32.totalorder %s1870_s27, 2  ;;  %s1139_s25 = scalar_lea.sflag [#allocation13], %s1138_s8 }
 0x58a   : > { %p1549_p4 = pnand %p2414_p0, %p2413_p13 }
 0x58c   : > { %1839 = dma.done.wait (!%p1549_p4), %s1139_s25, 1024  }
 0x58d   : > { %1841 = vsyncadd (!%p1549_p4), %s1139_s25, 4294966272  ;;  %s25_s27 = sadd.s32 1, %s1870_s27   ;;  %s2415_s21 = smov %s1850_s22 }
 0x58e   : > { %p22_p3 = scmp.ge.s32.totalorder %s25_s27, 4   ;;  %s2354_s22 = smov 0  }
 0x58f   : > { %s2416_s23 = smov %s1858_s24  ;;  %s2359_s24 = smov 0  }
 0x590   : > { %s2417_s25 = smov %s1866_s26  ;;  %s2418_s26 = smov %s2420_s28 }
 0x591   :  { %24 = sbr.rel (!%p22_p3) target bundleno = 11 (0xb), region = 133 }
 0x598   :  { %1144 = vsyncpa [#allocation6], 1 }
 0x599   :  { %1146 = vsyncpa [#allocation6 + $0x1], 1 }
 0x59a   :  { %1147 = vsyncpa [#allocation9], 1 }
 0x59b   :  { %1149 = vsyncpa [#allocation9 + $0x1], 1 }
 0x59c   :  { %1150 = vsyncpa [#allocation7], 1 }
 0x59d   :  { %1152 = vsyncpa [#allocation7 + $0x1], 1 }
 0x59e   :  { %1153 = vsyncpa [#allocation13], 1 }
 0x59f   :  { %1155 = vsyncpa [#allocation13 + $0x1], 1 }

</bundles_post_ra>
